<compile_context>
chip_gen: v7x
topology: tpu7x:2x2x1
jax: 0.10.0
libtpu: 0.0.40
codegen_flags: <defaults>
</compile_context>

<pallas_src>
import functools

import jax
import jax.numpy as jnp
from jax.experimental import pallas as pl
from jax.experimental.pallas import tpu as pltpu


def _round_up(v, m):
    return (v + m - 1) // m * m


def _vmem_budget_bytes():
    """Generation-aware VMEM budget: ~75% of physical VMEM (48 MiB on v7x,
    96 MiB on v5e/v6e), leaving headroom for compiler scratch / outputs."""
    cap = 64 * 1024 * 1024  # conservative fallback (v7x physical size)
    try:
        info = pltpu.get_tpu_info()
        cap = int(getattr(info, "vmem_capacity_bytes", cap)) or cap
    except Exception:
        pass
    return (cap * 3) // 4


def _pick_stage2_tiles(n_pad, h, budget):
    """Largest (TM, TK) dividing n_pad whose double-buffered footprint fits."""
    tm_cands = [t for t in (512, 256, 128) if n_pad % t == 0] or [n_pad]
    tk_cands = [t for t in (2048, 1024, 512, 256, 128) if n_pad % t == 0] or [n_pad]

    def vmem_use(tm, tk):
        g = 2 * tm * tk * 2        # double-buffered bf16 G stream
        xw = 2 * tk * h * 2        # xw K-slab (assume 2 pipeline buffers)
        acc = tm * h * 4           # f32 accumulator scratch
        out = 2 * tm * 4           # output tile
        misc = 2 * 1024 * 1024     # weights/biases + compiler scratch headroom
        return g + xw + acc + out + misc

    for tm in tm_cands:            # prefer the biggest row tile (tile sweep)
        for tk in tk_cands:        # and the biggest K tile that still fits
            if vmem_use(tm, tk) <= budget:
                return tm, tk
    return tm_cands[-1], tk_cands[-1]


# ---------------------------------------------------------------------------
# Kernels
# ---------------------------------------------------------------------------
def _xw_kernel(n_valid, tm, x_ref, w1_ref, b1_ref, xw_ref):
    """xw = x @ W1 + b1 (padded rows zeroed), stored as bf16 for stage 2."""
    xw = jnp.dot(x_ref[...], w1_ref[...], preferred_element_type=jnp.float32)
    xw = xw + b1_ref[...]
    row = pl.program_id(0) * tm + jax.lax.broadcasted_iota(jnp.int32, xw.shape, 0)
    xw = jnp.where(row < n_valid, xw, 0.0)
    xw_ref[...] = xw.astype(jnp.bfloat16)


def _conv_relu_fc_kernel(g_ref, xw_ref, w2_ref, b2_ref, out_ref, acc_ref):
    """acc += G_tile @ xw_slab over the K grid axis; relu + fc at last k."""
    k = pl.program_id(1)

    @pl.when(k == 0)
    def _():
        acc_ref[...] = jnp.zeros_like(acc_ref)

    acc_ref[...] += jnp.dot(g_ref[...], xw_ref[...],
                            preferred_element_type=jnp.float32)

    @pl.when(k == pl.num_programs(1) - 1)
    def _():
        h = jnp.maximum(acc_ref[...], 0.0)
        # fc(n_hid -> 1) as VPU multiply + lane reduce (no 1-wide MXU matmul).
        y = jnp.sum(h * w2_ref[...], axis=-1, keepdims=True)
        out_ref[...] = y + b2_ref[0]


def _fused_kernel(n_valid, x_ref, g_ref, w1_ref, b1_ref, w2_ref, b2_ref, out_ref):
    """Small-graph path: single ungridded call, everything VMEM-resident."""
    xw = jnp.dot(x_ref[...], w1_ref[...], preferred_element_type=jnp.float32)
    xw = xw + b1_ref[...]
    row = jax.lax.broadcasted_iota(jnp.int32, xw.shape, 0)
    xw = jnp.where(row < n_valid, xw, 0.0).astype(jnp.bfloat16)
    h = jnp.dot(g_ref[...], xw, preferred_element_type=jnp.float32)
    h = jnp.maximum(h, 0.0)
    y = jnp.sum(h * w2_ref[...], axis=-1, keepdims=True)
    out_ref[...] = y + b2_ref[0]


# ---------------------------------------------------------------------------
# Host-side wrappers
# ---------------------------------------------------------------------------
def prepare_hgnn_graph(G):
    """One-time (graph-construction-time) prep of the propagation matrix:
    zero-pad to a 128-aligned square and cast to bf16.  Hoisted out of
    hgnn_forward so repeated forward calls never pay an extra pad/cast pass
    over the dominant N^2 array."""
    n = G.shape[0]
    n_pad = _round_up(max(n, 128), 128)
    G_p = jnp.zeros((n_pad, n_pad), jnp.bfloat16)
    G_p = G_p.at[:n, :n].set(G.astype(jnp.bfloat16))
    return G_p


def hgnn_forward(x, G_padded, w1, b1, fc_w, fc_b, *, mode=None):
    """HGNN forward.
      x:        [N, C_in] f32 (unpadded node features)
      G_padded: [N_pad, N_pad] bf16 from prepare_hgnn_graph (zeros outside [:N,:N])
      w1: [C_in, H], b1: [H], fc_w: [1, H] (nn.Linear layout), fc_b: [1]
      mode: None (auto) | "fused" | "tiled"
    Returns [N, 1] f32."""
    N, C_in = x.shape
    H = w1.shape[1]
    N_pad = G_padded.shape[0]
    assert G_padded.shape == (N_pad, N_pad) and N_pad % 128 == 0 and N_pad >= N

    budget = _vmem_budget_bytes()

    # x / parameters are tiny; padding them per call is cheap.
    x_p = jnp.zeros((N_pad, C_in), jnp.float32).at[:N].set(x.astype(jnp.float32))
    w1_r = w1.astype(jnp.float32)
    b1_r = jnp.reshape(b1, (1, H)).astype(jnp.float32)
    w2_r = jnp.reshape(fc_w, (1, H)).astype(jnp.float32)
    b2_r = jnp.reshape(fc_b, (1,)).astype(jnp.float32)

    fused_bytes = (N_pad * N_pad * 2 + N_pad * C_in * 4 + N_pad * H * 6
                   + N_pad * 4 + (2 << 20))
    if mode is None:
        mode = "fused" if fused_bytes <= budget // 2 else "tiled"

    # ---- Small-graph fused path: one ungridded kernel, no pipeline overhead.
    if mode == "fused":
        out_p = pl.pallas_call(
            functools.partial(_fused_kernel, N),
            out_shape=jax.ShapeDtypeStruct((N_pad, 1), jnp.float32),
            in_specs=[
                pl.BlockSpec(memory_space=pltpu.MemorySpace.VMEM),  # x
                pl.BlockSpec(memory_space=pltpu.MemorySpace.VMEM),  # G
                pl.BlockSpec(memory_space=pltpu.MemorySpace.VMEM),  # w1
                pl.BlockSpec(memory_space=pltpu.MemorySpace.VMEM),  # b1
                pl.BlockSpec(memory_space=pltpu.MemorySpace.VMEM),  # fc weight
                pl.BlockSpec(memory_space=pltpu.MemorySpace.SMEM),  # fc bias
            ],
            out_specs=pl.BlockSpec(memory_space=pltpu.MemorySpace.VMEM),
            compiler_params=pltpu.CompilerParams(vmem_limit_bytes=budget),
            cost_estimate=pl.CostEstimate(
                flops=2 * N_pad * C_in * H + 2 * N_pad * N_pad * H + 2 * N_pad * H,
                transcendentals=0,
                bytes_accessed=N_pad * N_pad * 2 + N_pad * C_in * 4 + N_pad * 4,
            ),
        )(x_p, G_padded, w1_r, b1_r, w2_r, b2_r)
        return out_p[:N]

    # ---- Tiled path: VMEM-budget-aware row (TM) and contraction (TK) tiles.
    TM, TK = _pick_stage2_tiles(N_pad, H, budget)
    num_m = N_pad // TM
    num_k = N_pad // TK

    # Stage 1: xw = x @ W1 + b1 (bf16 out, padded rows zeroed), row-tiled.
    xw = pl.pallas_call(
        functools.partial(_xw_kernel, N, TM),
        out_shape=jax.ShapeDtypeStruct((N_pad, H), jnp.bfloat16),
        grid=(num_m,),
        in_specs=[
            pl.BlockSpec((TM, C_in), lambda i: (i, 0)),
            pl.BlockSpec((C_in, H), lambda i: (0, 0)),   # resident weight
            pl.BlockSpec((1, H), lambda i: (0, 0)),      # resident bias
        ],
        out_specs=pl.BlockSpec((TM, H), lambda i: (i, 0)),
        compiler_params=pltpu.CompilerParams(
            dimension_semantics=("parallel",), vmem_limit_bytes=budget),
    )(x_p, w1_r, b1_r)

    # Stage 2: y = ReLU(G @ xw) @ W2^T + b2, streaming G as (TM, TK) tiles
    # with an f32 accumulator; rows axis parallel (megacore), K axis arbitrary.
    y_p = pl.pallas_call(
        _conv_relu_fc_kernel,
        out_shape=jax.ShapeDtypeStruct((N_pad, 1), jnp.float32),
        grid=(num_m, num_k),
        in_specs=[
            pl.BlockSpec((TM, TK), lambda i, k: (i, k)),        # G stream
            pl.BlockSpec((TK, H), lambda i, k: (k, 0)),         # xw K-slab
            pl.BlockSpec((1, H), lambda i, k: (0, 0)),          # fc weight
            pl.BlockSpec(memory_space=pltpu.MemorySpace.SMEM),  # fc bias
        ],
        out_specs=pl.BlockSpec((TM, 1), lambda i, k: (i, 0)),
        scratch_shapes=[pltpu.VMEM((TM, H), jnp.float32)],      # f32 accumulator
        compiler_params=pltpu.CompilerParams(
            dimension_semantics=("parallel", "arbitrary"),
            vmem_limit_bytes=budget),
        cost_estimate=pl.CostEstimate(
            flops=2 * N_pad * N_pad * H + 2 * N_pad * H,
            transcendentals=0,
            bytes_accessed=N_pad * N_pad * 2 + num_m * N_pad * H * 2 + N_pad * 4,
        ),
    )(G_padded, xw, w2_r, b2_r)

    return y_p[:N]


if __name__ == "__main__":
    # Small, module-consistent shapes: N nodes, in_channels, n_hid.
    # 384 = 3 * 128 -> exercises both the row grid and the K (accumulator) grid.
    N, C_IN, N_HID = 384, 32, 32

    key = jax.random.PRNGKey(0)
    k_x, k_g, k_w1, k_b1, k_w2, k_b2 = jax.random.split(key, 6)

    x = jax.random.normal(k_x, (N, C_IN), dtype=jnp.float32)
    # Dense hypergraph propagation matrix (stand-in for the one built from
    # hyperedge_index_np); row-normalized so values stay well-conditioned.
    G_raw = jax.random.uniform(k_g, (N, N), dtype=jnp.float32)
    G = G_raw / jnp.sum(G_raw, axis=-1, keepdims=True)

    # Parameters with HGNN_conv / nn.Linear shapes.
    w1 = jax.random.normal(k_w1, (C_IN, N_HID), dtype=jnp.float32) * 0.1
    b1 = jax.random.normal(k_b1, (N_HID,), dtype=jnp.float32) * 0.1
    fc_w = jax.random.normal(k_w2, (1, N_HID), dtype=jnp.float32) * 0.1
    fc_b = jax.random.normal(k_b2, (1,), dtype=jnp.float32) * 0.1

    # One-time graph prep (pad + bf16 cast hoisted out of the forward pass).
    G_padded = prepare_hgnn_graph(G)

    # Exercise both dispatch paths.
    out_fused = jax.block_until_ready(
        hgnn_forward(x, G_padded, w1, b1, fc_w, fc_b, mode="fused"))
    out_tiled = jax.block_until_ready(
        hgnn_forward(x, G_padded, w1, b1, fc_w, fc_b, mode="tiled"))
    assert out_fused.shape == (N, 1) and out_tiled.shape == (N, 1)

    # Matched-precision reference (same bf16 casts as the kernels).
    xw_ref = (x @ w1 + b1[None, :]).astype(jnp.bfloat16).astype(jnp.float32)
    g_ref = G.astype(jnp.bfloat16).astype(jnp.float32)
    h_ref = jnp.maximum(g_ref @ xw_ref, 0.0)
    y_ref = h_ref @ fc_w.T + fc_b[None, :]
    assert jnp.allclose(out_fused, y_ref, atol=5e-3, rtol=5e-3)
    assert jnp.allclose(out_tiled, y_ref, atol=5e-3, rtol=5e-3)
    assert jnp.allclose(out_fused, out_tiled, atol=5e-3, rtol=5e-3)

    # Loose sanity check against the pure-f32 reference (bf16 quantization).
    y_f32 = jnp.maximum(G @ (x @ w1 + b1[None, :]), 0.0) @ fc_w.T + fc_b[None, :]
    assert jnp.allclose(out_fused, y_f32, atol=5e-2, rtol=5e-2)
    assert jnp.allclose(out_tiled, y_f32, atol=5e-2, rtol=5e-2)

    print("KERNEL_OK")
</pallas_src>

<mosaic_0001>
module attributes {stable_mosaic.version = 11 : i64} {
  func.func @_fused_kernel(%arg0: memref<384x32xf32, #tpu.memory_space<vmem>>, %arg1: memref<384x384xbf16, #tpu.memory_space<vmem>>, %arg2: memref<32x32xf32, #tpu.memory_space<vmem>>, %arg3: memref<1x32xf32, #tpu.memory_space<vmem>>, %arg4: memref<1x32xf32, #tpu.memory_space<vmem>>, %arg5: memref<1xf32, #tpu.memory_space<smem>>, %arg6: memref<384x1xf32, #tpu.memory_space<vmem>>) attributes {dimension_semantics = [], scalar_prefetch = 0 : i64, scratch_operands = 0 : i64, tpu.core_type = #tpu.core_type<tc>} {
    %c0 = arith.constant 0 : index
    %c0_0 = arith.constant 0 : index
    %0 = vector.load %arg0[%c0, %c0_0] : memref<384x32xf32, #tpu.memory_space<vmem>>, vector<384x32xf32>
    %c0_1 = arith.constant 0 : index
    %c0_2 = arith.constant 0 : index
    %1 = vector.load %arg2[%c0_1, %c0_2] : memref<32x32xf32, #tpu.memory_space<vmem>>, vector<32x32xf32>
    %cst = arith.constant dense<0.000000e+00> : vector<384x32xf32>
    %2 = tpu.matmul %0, %1, %cst {dimension_numbers = #tpu.dot_dimension_numbers<[1], [0], [0], [1], [0, 0, 1, 1], [], []>} : vector<384x32xf32>, vector<32x32xf32>, vector<384x32xf32> -> vector<384x32xf32>
    %c0_3 = arith.constant 0 : index
    %c0_4 = arith.constant 0 : index
    %3 = vector.load %arg3[%c0_3, %c0_4] : memref<1x32xf32, #tpu.memory_space<vmem>>, vector<1x32xf32>
    %4 = vector.broadcast %3 : vector<1x32xf32> to vector<384x32xf32>
    %5 = arith.addf %2, %4 : vector<384x32xf32>
    %6 = tpu.iota {dimensions = array<i32: 0>} : vector<384x32xi32>
    %c384_i32 = arith.constant 384 : i32
    %7 = vector.broadcast %c384_i32 : i32 to vector<384x32xi32>
    %8 = arith.cmpi slt, %6, %7 : vector<384x32xi32>
    %cst_5 = arith.constant 0.000000e+00 : f32
    %9 = vector.broadcast %cst_5 : f32 to vector<384x32xf32>
    %10 = arith.select %8, %5, %9 : vector<384x32xi1>, vector<384x32xf32>
    %11 = arith.truncf %10 : vector<384x32xf32> to vector<384x32xbf16>
    %c0_6 = arith.constant 0 : index
    %c0_7 = arith.constant 0 : index
    %12 = vector.load %arg1[%c0_6, %c0_7] : memref<384x384xbf16, #tpu.memory_space<vmem>>, vector<384x384xbf16>
    %cst_8 = arith.constant dense<0.000000e+00> : vector<384x32xf32>
    %13 = tpu.matmul %12, %11, %cst_8 {dimension_numbers = #tpu.dot_dimension_numbers<[1], [0], [0], [1], [0, 0, 1, 1], [], []>} : vector<384x384xbf16>, vector<384x32xbf16>, vector<384x32xf32> -> vector<384x32xf32>
    %cst_9 = arith.constant 0.000000e+00 : f32
    %14 = vector.broadcast %cst_9 : f32 to vector<384x32xf32>
    %15 = arith.maximumf %13, %14 : vector<384x32xf32>
    %c0_10 = arith.constant 0 : index
    %c0_11 = arith.constant 0 : index
    %16 = vector.load %arg4[%c0_10, %c0_11] : memref<1x32xf32, #tpu.memory_space<vmem>>, vector<1x32xf32>
    %17 = vector.broadcast %16 : vector<1x32xf32> to vector<384x32xf32>
    %18 = arith.mulf %15, %17 : vector<384x32xf32>
    %cst_12 = arith.constant dense<0.000000e+00> : vector<384xf32>
    %19 = vector.multi_reduction <add>, %18, %cst_12 [1] : vector<384x32xf32> to vector<384xf32>
    %20 = vector.shape_cast %19 : vector<384xf32> to vector<384x1xf32>
    %c0_13 = arith.constant 0 : index
    %21 = memref.load %arg5[%c0_13] : memref<1xf32, #tpu.memory_space<smem>>
    %22 = vector.broadcast %21 : f32 to vector<384x1xf32>
    %23 = arith.addf %20, %22 : vector<384x1xf32>
    %c0_14 = arith.constant 0 : index
    %c0_15 = arith.constant 0 : index
    %24 = vector.load %arg6[%c0_14, %c0_15] : memref<384x1xf32, #tpu.memory_space<vmem>>, vector<384x1xf32>
    tpu.vector_store %arg6[%c0_14, %c0_15], %23 {strides = array<i32>} : memref<384x1xf32, #tpu.memory_space<vmem>>, vector<384x1xf32>,
    return
  }
}

</mosaic_0001>

<bundles_post_ra>
// kernel: tpu_custom_call.1
= control target key start
LH: loop header
LB: loop body
LE: loop exit
PB: predicated region body
PF: predicated region fallthrough
CT: control target
= control target key end

     0   :  { %12 = vsyncpa [#allocation4], 0  ;;  %s2480_s21 = smov [#allocation3]   ;;  %s3204_s0 = inlined_call_operand.vmem [shape: f32[384,32], index: 0, kind: input, shape index: {}]   ;;  %s3205_s1 = inlined_call_operand.hbm [shape: bf16[384,384], index: 1, kind: input, shape index: {}]   ;;  %s3206_s2 = inlined_call_operand.vmem [shape: f32[32,32], index: 2, kind: input, shape index: {}]   ;;  %s3207_s3 = inlined_call_operand.vmem [shape: f32[1,32], index: 3, kind: input, shape index: {}]   ;;  %s3208_s4 = inlined_call_operand.vmem [shape: f32[1,32], index: 4, kind: input, shape index: {}]   ;;  %s3209_s5 = inlined_call_operand.<no memory space> [shape: f32[1], index: 5, kind: input, shape index: {}]   ;;  %s3210_s6 = inlined_call_operand.vmem [shape: f32[384,1], index: 6, kind: output, shape index: {}]  }
   0x1   :  { %s20_s22 = sshll.u32 %s2480_s21, 4  ;;  %s2456_s25 = scalar_lea.hbm %s3205_s1, 9216  ;;  %s21_s22 = int_to_ptr.vmem [resolvable:$true] %s20_s22 }
   0x2   :  { %p2457_p0 = scmp.ne.s32.totalorder %s3205_s1, %s2456_s25  ;;  %p2460_p1 = scmp.lt.u32.totalorder %s2456_s25, %s3205_s1 }
   0x4   :  { %p2462_p2 = pnand %p2460_p1, %p2457_p0 }
   0x6   :  { %2465 = shalt.err (!%p2462_p2)
}
   0x7   :  { %s2466_s30 = scalar_lea.vmem %s21_s22, 9216  ;;  %p2471_p4 = scmp.lt.s32.totalorder %s21_s22, %s21_s22 }
   0x8   :  { %p2467_p3 = scmp.ne.s32.totalorder %s21_s22, %s2466_s30  ;;  %p2472_p5 = scmp.lt.s32.totalorder %s2466_s30, %s2466_s30 }
   0xa   :  { %p2473_p6 = por %p2472_p5, %p2471_p4 }
   0xc   :  { %p2474_p7 = pnand %p2473_p6, %p2467_p3 }
   0xe   :  { %2477 = shalt.err (!%p2474_p7)
}
   0xf   :  { %s2481_s7 = smov 192   ;;  %s2482_s8 = smov 12  }
  0x10   :  { %26 = dma.hbm_to_vmem [thread:$0]  %s3205_s1, 9216, %s21_s22, [#allocation4], %s2481_s7, %s2481_s7, %s2482_s8  }
  0x11   :  { %2478 = dma.done.wait [#allocation4], 9216  }
  0x12   :  { %2479 = vsyncadd [#allocation4], 4294958080  ;;  %vm98_vm0 = vcmask 261120   ;;  %v87_v0 = vld [vmem:[%s3206_s2] sm:$0xff]  ;;  %v88_v1 = vld [vmem:[%s3206_s2 + $0x8] sm:$0xff]  ;;  %v2483_v53 = vmov 0  }
  0x13   :  { %v89_v2 = vld [vmem:[%s3206_s2 + $0x10] sm:$0xff]  ;;  %v2348_v3 = vpack.c.bf16 %v88_v1, %v87_v0  ;;  %v90_v4 = vld [vmem:[%s3206_s2 + $0x18] sm:$0xff]  ;;  %v39_v5 = vld [vmem:[%s3204_s0] sm:$0xff]  ;;  %1197 = vmatprep.subr.bf16.mxu1 %v2483_v53  ;;  %vm1944_vm1 = vcmask 7168  }
  0x14   :  { %v2352_v6 = vpack.c.bf16 %v90_v4, %v89_v2  ;;  %2212 = vmatprep.mubr.msk.f32.mxu0 %vm98_vm0, %v39_v5  ;;  %v40_v7 = vld [vmem:[%s3204_s0 + $0x8] sm:$0xff]  ;;  %v41_v8 = vld [vmem:[%s3204_s0 + $0x10] sm:$0xff]  ;;  %v42_v9 = vld [vmem:[%s3204_s0 + $0x18] sm:$0xff] }
  0x15   :  { %2349 = vmatprep.subr.bf16.mxu0 %v2348_v3  ;;  %v43_v10 = vld [vmem:[%s3204_s0 + $0x20] sm:$0xff]  ;;  %v44_v11 = vld [vmem:[%s3204_s0 + $0x28] sm:$0xff]  ;;  %v45_v12 = vld [vmem:[%s3204_s0 + $0x30] sm:$0xff] }
  0x16   :  { %2351 = vmatpush3.bf16.msra.mxu0 %v2348_v3  ;;  %v46_v13 = vld [vmem:[%s3204_s0 + $0x38] sm:$0xff]  ;;  %v47_v14 = vld [vmem:[%s3204_s0 + $0x40] sm:$0xff]  ;;  %v48_v15 = vld [vmem:[%s3204_s0 + $0x48] sm:$0xff] }
  0x17   :  { %2353 = vmatprep.subr.bf16.mxu0 %v2352_v6  ;;  %v49_v16 = vld [vmem:[%s3204_s0 + $0x50] sm:$0xff]  ;;  %v50_v17 = vld [vmem:[%s3204_s0 + $0x58] sm:$0xff]  ;;  %v51_v18 = vld [vmem:[%s3204_s0 + $0x60] sm:$0xff] }
  0x18   :  { %v52_v19 = vld [vmem:[%s3204_s0 + $0x68] sm:$0xff]  ;;  %v53_v20 = vld [vmem:[%s3204_s0 + $0x70] sm:$0xff]  ;;  %v54_v21 = vld [vmem:[%s3204_s0 + $0x78] sm:$0xff] }
  0x19   :  { %v55_v22 = vld [vmem:[%s3204_s0 + $0x80] sm:$0xff]  ;;  %v56_v23 = vld [vmem:[%s3204_s0 + $0x88] sm:$0xff]  ;;  %v57_v24 = vld [vmem:[%s3204_s0 + $0x90] sm:$0xff] }
  0x1a   :  { %2355 = vmatpush3.bf16.msra.mxu0 %v2352_v6  ;;  %v58_v25 = vld [vmem:[%s3204_s0 + $0x98] sm:$0xff]  ;;  %v59_v26 = vld [vmem:[%s3204_s0 + $0xa0] sm:$0xff]  ;;  %v60_v27 = vld [vmem:[%s3204_s0 + $0xa8] sm:$0xff] }
  0x1b   :  { %v61_v28 = vld [vmem:[%s3204_s0 + $0xb0] sm:$0xff]  ;;  %v62_v29 = vld [vmem:[%s3204_s0 + $0xb8] sm:$0xff]  ;;  %v63_v30 = vld [vmem:[%s3204_s0 + $0xc0] sm:$0xff] }
  0x1c   :  { %v64_v31 = vld [vmem:[%s3204_s0 + $0xc8] sm:$0xff]  ;;  %v65_v32 = vld [vmem:[%s3204_s0 + $0xd0] sm:$0xff]  ;;  %v66_v33 = vld [vmem:[%s3204_s0 + $0xd8] sm:$0xff] }
  0x1d   :  { %2213 = vmatmul.mubr.msk.f32.vlgmr.msra.gmra.mrb[0].mxu0 %vm98_vm0, %v40_v7  ;;  %v67_v34 = vld [vmem:[%s3204_s0 + $0xe0] sm:$0xff]  ;;  %v68_v35 = vld [vmem:[%s3204_s0 + $0xe8] sm:$0xff]  ;;  %v69_v36 = vld [vmem:[%s3204_s0 + $0xf0] sm:$0xff] }
  0x1e   :  { %2215 = vmatprep.mubr.msk.f32.mxu0 %vm98_vm0, %v41_v8  ;;  %v70_v37 = vld [vmem:[%s3204_s0 + $0xf8] sm:$0xff]  ;;  %v71_v38 = vld [vmem:[%s3204_s0 + $0x100] sm:$0xff]  ;;  %v72_v39 = vld [vmem:[%s3204_s0 + $0x108] sm:$0xff] }
  0x1f   :  { %v73_v40 = vld [vmem:[%s3204_s0 + $0x110] sm:$0xff]  ;;  %v74_v41 = vld [vmem:[%s3204_s0 + $0x118] sm:$0xff]  ;;  %v75_v42 = vld [vmem:[%s3204_s0 + $0x120] sm:$0xff] }
  0x20   :  { %v76_v43 = vld [vmem:[%s3204_s0 + $0x128] sm:$0xff]  ;;  %v77_v44 = vld [vmem:[%s3204_s0 + $0x130] sm:$0xff]  ;;  %v78_v45 = vld [vmem:[%s3204_s0 + $0x138] sm:$0xff] }
  0x21   :  { %2216 = vmatmul.mubr.msk.f32.gmra.mrb[2].mxu0 %vm98_vm0, %v42_v9  ;;  %v79_v46 = vld [vmem:[%s3204_s0 + $0x140] sm:$0xff]  ;;  %v80_v47 = vld [vmem:[%s3204_s0 + $0x148] sm:$0xff]  ;;  %v81_v48 = vld [vmem:[%s3204_s0 + $0x150] sm:$0xff] }
  0x22   :  { %2218 = vmatprep.mubr.msk.f32.mxu0 %vm98_vm0, %v43_v10  ;;  %v82_v49 = vld [vmem:[%s3204_s0 + $0x158] sm:$0xff]  ;;  %v83_v50 = vld [vmem:[%s3204_s0 + $0x160] sm:$0xff]  ;;  %v84_v51 = vld [vmem:[%s3204_s0 + $0x168] sm:$0xff] }
  0x23   :  { %v85_v52 = vld [vmem:[%s3204_s0 + $0x170] sm:$0xff]  ;;  %v86_v54 = vld [vmem:[%s3204_s0 + $0x178] sm:$0xff]  ;;  %v2739_v57 = vld [vmem:[%s3207_s3] ss:$0 sm:$0xff] }
  0x24   :  { %v2362_v55 = vld [vmem:[#allocation3 + $0x4] ss:$12 sps:$4 sm:$0xff]   ;;  %v2375_v56 = vld [vmem:[#allocation3 + $0x8] ss:$12 sps:$4 sm:$0xff]  }
  0x25   :  { %2219 = vmatmul.mubr.msk.f32.gmra.mrb[4].mxu0 %vm98_vm0, %v44_v11  ;;  %1229 = vmatprep.mubr.bf16.mxu1 %v2362_v55 }
  0x26   :  { %2221 = vmatprep.mubr.msk.f32.mxu0 %vm98_vm0, %v45_v12 }
  0x29   :  { %2222 = vmatmul.mubr.msk.f32.gmra.mrb[6].mxu0 %vm98_vm0, %v46_v13 }
  0x2a   :  { %2224 = vmatprep.mubr.msk.f32.mxu0 %vm98_vm0, %v47_v14 }
  0x2d   :  { %2225 = vmatmul.mubr.msk.f32.gmra.mrb[8].mxu0 %vm98_vm0, %v48_v15 }
  0x2e   :  { %2227 = vmatprep.mubr.msk.f32.mxu0 %vm98_vm0, %v49_v16 }
  0x31   :  { %2228 = vmatmul.mubr.msk.f32.gmra.mrb[10].mxu0 %vm98_vm0, %v50_v17 }
  0x32   :  { %2230 = vmatprep.mubr.msk.f32.mxu0 %vm98_vm0, %v51_v18 }
  0x35   :  { %2231 = vmatmul.mubr.msk.f32.gmra.mrb[12].mxu0 %vm98_vm0, %v52_v19 }
  0x36   :  { %2233 = vmatprep.mubr.msk.f32.mxu0 %vm98_vm0, %v53_v20 }
  0x39   :  { %2234 = vmatmul.mubr.msk.f32.gmra.mrb[14].mxu0 %vm98_vm0, %v54_v21 }
  0x3a   :  { %2236 = vmatprep.mubr.msk.f32.mxu0 %vm98_vm0, %v55_v22 }
  0x3d   :  { %2237 = vmatmul.mubr.msk.f32.gmra.mrb[16].mxu0 %vm98_vm0, %v56_v23 }
  0x3e   :  { %2239 = vmatprep.mubr.msk.f32.mxu0 %vm98_vm0, %v57_v24 }
  0x41   :  { %2240 = vmatmul.mubr.msk.f32.gmra.mrb[18].mxu0 %vm98_vm0, %v58_v25 }
  0x42   :  { %2242 = vmatprep.mubr.msk.f32.mxu0 %vm98_vm0, %v59_v26 }
  0x45   :  { %2243 = vmatmul.mubr.msk.f32.gmra.mrb[20].mxu0 %vm98_vm0, %v60_v27 }
  0x46   :  { %2245 = vmatprep.mubr.msk.f32.mxu0 %vm98_vm0, %v61_v28 }
  0x49   :  { %2246 = vmatmul.mubr.msk.f32.gmra.mrb[22].mxu0 %vm98_vm0, %v62_v29 }
  0x4a   :  { %2248 = vmatprep.mubr.msk.f32.mxu0 %vm98_vm0, %v63_v30 }
  0x4d   :  { %2249 = vmatmul.mubr.msk.f32.gmra.mrb[24].mxu0 %vm98_vm0, %v64_v31 }
  0x4e   :  { %2251 = vmatprep.mubr.msk.f32.mxu0 %vm98_vm0, %v65_v32 }
  0x51   :  { %2252 = vmatmul.mubr.msk.f32.gmra.mrb[26].mxu0 %vm98_vm0, %v66_v33 }
  0x52   :  { %2254 = vmatprep.mubr.msk.f32.mxu0 %vm98_vm0, %v67_v34 }
  0x55   :  { %2255 = vmatmul.mubr.msk.f32.gmra.mrb[28].mxu0 %vm98_vm0, %v68_v35 }
  0x56   :  { %2257 = vmatprep.mubr.msk.f32.mxu0 %vm98_vm0, %v69_v36 }
  0x59   :  { %2258 = vmatmul.mubr.msk.f32.gmra.mrb[30].mxu0 %vm98_vm0, %v70_v37 }
  0x5a   :  { %2260 = vmatprep.mubr.msk.f32.mxu0 %vm98_vm0, %v71_v38 }
  0x5d   :  { %2261 = vmatmul.mubr.msk.f32.gmra.mrb[32].mxu0 %vm98_vm0, %v72_v39 }
  0x5e   :  { %2263 = vmatprep.mubr.msk.f32.mxu0 %vm98_vm0, %v73_v40 }
  0x61   :  { %2264 = vmatmul.mubr.msk.f32.gmra.mrb[34].mxu0 %vm98_vm0, %v74_v41 }
  0x62   :  { %2266 = vmatprep.mubr.msk.f32.mxu0 %vm98_vm0, %v75_v42 }
  0x65   :  { %2267 = vmatmul.mubr.msk.f32.gmra.mrb[36].mxu0 %vm98_vm0, %v76_v43 }
  0x66   :  { %2269 = vmatprep.mubr.msk.f32.mxu0 %vm98_vm0, %v77_v44 }
  0x69   :  { %2270 = vmatmul.mubr.msk.f32.gmra.mrb[38].mxu0 %vm98_vm0, %v78_v45 }
  0x6a   :  { %2272 = vmatprep.mubr.msk.f32.mxu0 %vm98_vm0, %v79_v46 }
  0x6d   :  { %2273 = vmatmul.mubr.msk.f32.gmra.mrb[40].mxu0 %vm98_vm0, %v80_v47 }
  0x6e   :  { %2275 = vmatprep.mubr.msk.f32.mxu0 %vm98_vm0, %v81_v48 }
  0x71   :  { %2276 = vmatmul.mubr.msk.f32.gmra.mrb[42].mxu0 %vm98_vm0, %v82_v49 }
  0x72   :  { %2278 = vmatprep.mubr.msk.f32.mxu0 %vm98_vm0, %v83_v50 }
  0x75   :  { %2279 = vmatmul.mubr.msk.f32.gmra.mrb[44].mxu0 %vm98_vm0, %v84_v51 }
  0x76   :  { %2281 = vmatprep.mubr.msk.f32.mxu0 %vm98_vm0, %v85_v52 }
  0x79   :  { %2282 = vmatmul.mubr.msk.f32.gmra.mrb[46].mxu0 %vm98_vm0, %v86_v54 }
  0x7a   :  { %2300 = vmatprep.mubr.bf16.mxu0 %v2375_v56 }
  0xf0   :  { %v2214_v58 = vpop.f32.mrb[0].mxu0 }
  0xf1   :  { %v315_v59 = vadd.f32 %v2214_v58, %v2739_v57  ;;  %v309_v60 = vpop.f32.mrb[1].mxu0 }
  0xf2   :  { %v310_v61 = vadd.f32 %v2739_v57, %v309_v60 }
  0xf4   :  { %v2217_v62 = vpop.f32.mrb[2].mxu0  ;;  %v693_v63 = vpack.c.bf16 %v315_v59, %v310_v61 }
  0xf5   :  { %v325_v0 = vadd.f32 %v2217_v62, %v2739_v57  ;;  %v319_v1 = vpop.f32.mrb[3].mxu0 }
  0xf6   :  { %v320_v2 = vadd.f32 %v2739_v57, %v319_v1  ;;  %1198 = vmatpush1.bf16.msra.mxu1 %v693_v63 }
  0xf7   :  { %1199 = vmatprep.subr.bf16.mxu1 %v2483_v53 }
  0xf8   :  { %v694_v3 = vpack.c.bf16 %v325_v0, %v320_v2  ;;  %v2220_v4 = vpop.f32.mrb[4].mxu0 }
  0xf9   :  { %v335_v5 = vadd.f32 %v2220_v4, %v2739_v57  ;;  %v329_v6 = vpop.f32.mrb[5].mxu0 }
  0xfa   :  { %v330_v7 = vadd.f32 %v2739_v57, %v329_v6  ;;  %1200 = vmatpush1.bf16.msra.mxu1 %v694_v3 }
  0xfb   :  { %1201 = vmatprep.subr.bf16.mxu1 %v2483_v53 }
  0xfc   :  { %v695_v8 = vpack.c.bf16 %v335_v5, %v330_v7  ;;  %v2223_v9 = vpop.f32.mrb[6].mxu0 }
  0xfd   :  { %v345_v10 = vadd.f32 %v2223_v9, %v2739_v57  ;;  %v339_v11 = vpop.f32.mrb[7].mxu0 }
  0xfe   :  { %v340_v12 = vadd.f32 %v2739_v57, %v339_v11  ;;  %1202 = vmatpush1.bf16.msra.mxu1 %v695_v8 }
  0xff   :  { %1203 = vmatprep.subr.bf16.mxu1 %v2483_v53 }
 0x100   :  { %v696_v13 = vpack.c.bf16 %v345_v10, %v340_v12  ;;  %v2226_v14 = vpop.f32.mrb[8].mxu0 }
 0x101   :  { %v355_v15 = vadd.f32 %v2226_v14, %v2739_v57  ;;  %v349_v16 = vpop.f32.mrb[9].mxu0 }
 0x102   :  { %v350_v17 = vadd.f32 %v2739_v57, %v349_v16  ;;  %1204 = vmatpush1.bf16.msra.mxu1 %v696_v13 }
 0x103   :  { %1205 = vmatprep.subr.bf16.mxu1 %v2483_v53 }
 0x104   :  { %v697_v18 = vpack.c.bf16 %v355_v15, %v350_v17  ;;  %v2229_v19 = vpop.f32.mrb[10].mxu0  ;;  %v2360_v15 = vld [vmem:[#allocation3] ss:$12 sps:$4 sm:$0xff]   ;;  %v2363_v17 = vld [vmem:[#allocation3 + $0x1c] ss:$12 sps:$4 sm:$0xff]  }
 0x105   :  { %v365_v20 = vadd.f32 %v2229_v19, %v2739_v57  ;;  %v359_v21 = vpop.f32.mrb[11].mxu0 }
 0x106   :  { %v360_v22 = vadd.f32 %v2739_v57, %v359_v21  ;;  %1206 = vmatpush1.bf16.msra.mxu1 %v697_v18 }
 0x107   :  { %1207 = vmatprep.subr.bf16.mxu1 %v2483_v53 }
 0x108   :  { %v698_v23 = vpack.c.bf16 %v365_v20, %v360_v22  ;;  %v2232_v24 = vpop.f32.mrb[12].mxu0 }
 0x109   :  { %v375_v25 = vadd.f32 %v2232_v24, %v2739_v57  ;;  %v369_v26 = vpop.f32.mrb[13].mxu0 }
 0x10a   :  { %v370_v27 = vadd.f32 %v2739_v57, %v369_v26  ;;  %1208 = vmatpush1.bf16.msra.mxu1 %v698_v23  ;;  %v2365_v26 = vld [vmem:[#allocation3 + $0x18] ss:$12 sps:$4 sm:$0xff]  }
 0x10b   :  { %1209 = vmatprep.subr.bf16.mxu1 %v2483_v53 }
 0x10c   :  { %v699_v28 = vpack.c.bf16 %v375_v25, %v370_v27  ;;  %v2235_v29 = vpop.f32.mrb[14].mxu0 }
 0x10d   :  { %v385_v30 = vadd.f32 %v2235_v29, %v2739_v57  ;;  %v379_v31 = vpop.f32.mrb[15].mxu0 }
 0x10e   :  { %v380_v32 = vadd.f32 %v2739_v57, %v379_v31  ;;  %1210 = vmatpush1.bf16.msra.mxu1 %v699_v28  ;;  %v2366_v28 = vld [vmem:[#allocation3 + $0x34] ss:$12 sps:$4 sm:$0xff]  }
 0x10f   :  { %1211 = vmatprep.subr.bf16.mxu1 %v2483_v53 }
 0x110   :  { %v700_v33 = vpack.c.bf16 %v385_v30, %v380_v32  ;;  %v2238_v34 = vpop.f32.mrb[16].mxu0 }
 0x111   :  { %v395_v35 = vadd.f32 %v2238_v34, %v2739_v57  ;;  %v389_v36 = vpop.f32.mrb[17].mxu0 }
 0x112   :  { %v390_v37 = vadd.f32 %v2739_v57, %v389_v36  ;;  %1212 = vmatpush1.bf16.msra.mxu1 %v700_v33 }
 0x113   :  { %1213 = vmatprep.subr.bf16.mxu1 %v2483_v53 }
 0x114   :  { %v701_v38 = vpack.c.bf16 %v395_v35, %v390_v37  ;;  %v2241_v39 = vpop.f32.mrb[18].mxu0 }
 0x115   :  { %v405_v40 = vadd.f32 %v2241_v39, %v2739_v57  ;;  %v399_v41 = vpop.f32.mrb[19].mxu0 }
 0x116   :  { %v400_v42 = vadd.f32 %v2739_v57, %v399_v41  ;;  %1214 = vmatpush1.bf16.msra.mxu1 %v701_v38  ;;  %v2368_v38 = vld [vmem:[#allocation3 + $0x30] ss:$12 sps:$4 sm:$0xff]  }
 0x117   :  { %1215 = vmatprep.subr.bf16.mxu1 %v2483_v53 }
 0x118   :  { %v702_v43 = vpack.c.bf16 %v405_v40, %v400_v42  ;;  %v2244_v44 = vpop.f32.mrb[20].mxu0  ;;  %v2369_v40 = vld [vmem:[#allocation3 + $0x4c] ss:$12 sps:$4 sm:$0xff]  }
 0x119   :  { %v415_v45 = vadd.f32 %v2244_v44, %v2739_v57  ;;  %v409_v46 = vpop.f32.mrb[21].mxu0 }
 0x11a   :  { %v410_v47 = vadd.f32 %v2739_v57, %v409_v46  ;;  %1216 = vmatpush1.bf16.msra.mxu1 %v702_v43 }
 0x11b   :  { %1217 = vmatprep.subr.bf16.mxu1 %v2483_v53 }
 0x11c   :  { %v703_v48 = vpack.c.bf16 %v415_v45, %v410_v47  ;;  %v2247_v49 = vpop.f32.mrb[22].mxu0 }
 0x11d   :  { %v425_v50 = vadd.f32 %v2247_v49, %v2739_v57  ;;  %v419_v51 = vpop.f32.mrb[23].mxu0 }
 0x11e   :  { %v420_v52 = vadd.f32 %v2739_v57, %v419_v51  ;;  %1218 = vmatpush1.bf16.msra.mxu1 %v703_v48 }
 0x11f   :  { %1219 = vmatprep.subr.bf16.mxu1 %v2483_v53 }
 0x120   :  { %v704_v54 = vpack.c.bf16 %v425_v50, %v420_v52  ;;  %v2250_v55 = vpop.f32.mrb[24].mxu0  ;;  %v2371_v50 = vld [vmem:[#allocation3 + $0x48] ss:$12 sps:$4 sm:$0xff]   ;;  %v2372_v52 = vld [vmem:[#allocation3 + $0x64] ss:$12 sps:$4 sm:$0xff]  }
 0x121   :  { %v435_v56 = vadd.f32 %v2250_v55, %v2739_v57  ;;  %v429_v58 = vpop.f32.mrb[25].mxu0 }
 0x122   :  { %v430_v59 = vadd.f32 %v2739_v57, %v429_v58  ;;  %1220 = vmatpush1.bf16.msra.mxu1 %v704_v54 }
 0x123   :  { %1221 = vmatprep.subr.bf16.mxu1 %v2483_v53 }
 0x124   :  { %v705_v60 = vpack.c.bf16 %v435_v56, %v430_v59  ;;  %v2253_v61 = vpop.f32.mrb[26].mxu0 }
 0x125   :  { %v445_v62 = vadd.f32 %v2253_v61, %v2739_v57  ;;  %v439_v63 = vpop.f32.mrb[27].mxu0  ;;  %v2374_v61 = vld [vmem:[#allocation3 + $0x60] ss:$12 sps:$4 sm:$0xff]  }
 0x126   :  { %v440_v0 = vadd.f32 %v2739_v57, %v439_v63  ;;  %1222 = vmatpush1.bf16.msra.mxu1 %v705_v60  ;;  %v2377_v63 = vld [vmem:[#allocation3 + $0x7c] ss:$12 sps:$4 sm:$0xff]  }
 0x127   :  { %1223 = vmatprep.subr.bf16.mxu1 %v2483_v53 }
 0x128   :  { %v706_v1 = vpack.c.bf16 %v445_v62, %v440_v0  ;;  %v2256_v2 = vpop.f32.mrb[28].mxu0  ;;  %v2376_v62 = vld [vmem:[#allocation3 + $0x20] ss:$12 sps:$4 sm:$0xff]   ;;  %v2380_v0 = vld [vmem:[#allocation3 + $0x38] ss:$12 sps:$4 sm:$0xff]  }
 0x129   :  { %v455_v3 = vadd.f32 %v2256_v2, %v2739_v57  ;;  %v449_v4 = vpop.f32.mrb[29].mxu0  ;;  %v2381_v2 = vld [vmem:[#allocation3 + $0x50] ss:$12 sps:$4 sm:$0xff]  }
 0x12a   :  { %v450_v5 = vadd.f32 %v2739_v57, %v449_v4  ;;  %1224 = vmatpush1.bf16.msra.mxu1 %v706_v1  ;;  %v2379_v1 = vld [vmem:[#allocation3 + $0x78] ss:$12 sps:$4 sm:$0xff]   ;;  %v2385_v4 = vld [vmem:[#allocation3 + $0x68] ss:$12 sps:$4 sm:$0xff]  }
 0x12b   :  { %1225 = vmatprep.subr.bf16.mxu1 %v2483_v53 }
 0x12c   :  { %v707_v6 = vpack.c.bf16 %v455_v3, %v450_v5  ;;  %v2259_v7 = vpop.f32.mrb[30].mxu0  ;;  %v2382_v3 = vld [vmem:[#allocation3 + $0x94] ss:$12 sps:$4 sm:$0xff]  }
 0x12d   :  { %v465_v8 = vadd.f32 %v2259_v7, %v2739_v57  ;;  %v459_v9 = vpop.f32.mrb[31].mxu0  ;;  %v2386_v5 = vld [vmem:[#allocation3 + $0x80] ss:$12 sps:$4 sm:$0xff]   ;;  %v2390_v7 = vld [vmem:[#allocation3 + $0x98] ss:$12 sps:$4 sm:$0xff]  }
 0x12e   :  { %v460_v10 = vadd.f32 %v2739_v57, %v459_v9  ;;  %1226 = vmatpush1.bf16.msra.mxu1 %v707_v6  ;;  %v2387_v6 = vld [vmem:[#allocation3 + $0xac] ss:$12 sps:$4 sm:$0xff]   ;;  %v2391_v9 = vld [vmem:[#allocation3 + $0xb0] ss:$12 sps:$4 sm:$0xff]  }
 0x12f   :  { %1227 = vmatprep.subr.bf16.mxu1 %v2483_v53 }
 0x130   :  { %v708_v11 = vpack.c.bf16 %v465_v8, %v460_v10  ;;  %v2262_v12 = vpop.f32.mrb[32].mxu0  ;;  %v2389_v8 = vld [vmem:[#allocation3 + $0xa8] ss:$12 sps:$4 sm:$0xff]   ;;  %v2392_v10 = vld [vmem:[#allocation3 + $0xc4] ss:$12 sps:$4 sm:$0xff]  }
 0x131   :  { %v475_v13 = vadd.f32 %v2262_v12, %v2739_v57  ;;  %v469_v14 = vpop.f32.mrb[33].mxu0  ;;  %v2394_v12 = vld [vmem:[#allocation3 + $0xc0] ss:$12 sps:$4 sm:$0xff]  }
 0x132   :  { %v470_v16 = vadd.f32 %v2739_v57, %v469_v14  ;;  %1228 = vmatpush1.bf16.msra.mxu1 %v708_v11  ;;  %v2395_v11 = vld [vmem:[#allocation3 + $0xc8] ss:$12 sps:$4 sm:$0xff]  }
 0x133   :  { %v2397_v14 = vld [vmem:[#allocation3 + $0xdc] ss:$12 sps:$4 sm:$0xff]  }
 0x134   :  { %v709_v18 = vpack.c.bf16 %v475_v13, %v470_v16  ;;  %v2265_v19 = vpop.f32.mrb[34].mxu0  ;;  %v2396_v13 = vld [vmem:[#allocation3 + $0xe0] ss:$12 sps:$4 sm:$0xff]   ;;  %v2399_v16 = vld [vmem:[#allocation3 + $0xd8] ss:$12 sps:$4 sm:$0xff]  }
 0x135   :  { %v485_v20 = vadd.f32 %v2265_v19, %v2739_v57  ;;  %v479_v21 = vpop.f32.mrb[35].mxu0  ;;  %1230 = vmatmul.mubr.bf16.vlgmr.msra.gmra.mrb[0].mxu1 %v2360_v15  ;;  %v2403_v15 = vld [vmem:[#allocation3 + $0xf8] ss:$12 sps:$4 sm:$0xff]   ;;  %v2411_v19 = vld [vmem:[#allocation3 + $0x128] ss:$12 sps:$4 sm:$0xff]  }
 0x136   :  { %v480_v22 = vadd.f32 %v2739_v57, %v479_v21  ;;  %2284 = vmatprep.subr.bf16.mxu0 %v709_v18  ;;  %1237 = vmatprep.mubr.bf16.mxu1 %v2363_v17  ;;  %v2400_v17 = vld [vmem:[#allocation3 + $0xf4] ss:$12 sps:$4 sm:$0xff]   ;;  %v2405_v21 = vld [vmem:[#allocation3 + $0x10c] ss:$12 sps:$4 sm:$0xff]  }
 0x137   :  { %2285 = vmatpush3.bf16.msra.mxu0 %v709_v18  ;;  %v2404_v18 = vld [vmem:[#allocation3 + $0x110] ss:$12 sps:$4 sm:$0xff]  }
 0x138   :  { %v710_v53 = vpack.c.bf16 %v485_v20, %v480_v22  ;;  %v2268_v23 = vpop.f32.mrb[36].mxu0  ;;  %v2402_v20 = vld [vmem:[#allocation3 + $0xf0] ss:$12 sps:$4 sm:$0xff]   ;;  %v2412_v22 = vld [vmem:[#allocation3 + $0x140] ss:$12 sps:$4 sm:$0xff]  }
 0x139   :  { %v495_v24 = vadd.f32 %v2268_v23, %v2739_v57  ;;  %v489_v25 = vpop.f32.mrb[37].mxu0  ;;  %v2407_v23 = vld [vmem:[#allocation3 + $0x108] ss:$12 sps:$4 sm:$0xff]  }
 0x13a   :  { %v490_v27 = vadd.f32 %v2739_v57, %v489_v25  ;;  %2286 = vmatprep.subr.bf16.mxu0 %v710_v53  ;;  %v2420_v25 = vld [vmem:[#allocation3 + $0x170] ss:$12 sps:$4 sm:$0xff]  }
 0x13b   :  { %2287 = vmatpush3.bf16.msra.mxu0 %v710_v53  ;;  %v2419_v53 = vld [vmem:[#allocation3 + $0x158] ss:$12 sps:$4 sm:$0xff]  }
 0x13c   :  { %v711_v29 = vpack.c.bf16 %v495_v24, %v490_v27  ;;  %v2271_v30 = vpop.f32.mrb[38].mxu0  ;;  %v2408_v24 = vld [vmem:[#allocation3 + $0x124] ss:$12 sps:$4 sm:$0xff]   ;;  %v2410_v27 = vld [vmem:[#allocation3 + $0x120] ss:$12 sps:$4 sm:$0xff]  }
 0x13d   :  { %v505_v31 = vadd.f32 %v2271_v30, %v2739_v57  ;;  %v499_v32 = vpop.f32.mrb[39].mxu0  ;;  %1238 = vmatmul.mubr.bf16.gmra.mrb[4].mxu1 %v2365_v26  ;;  %v2427_v26 = vld [vmem:[#allocation3 + $0x188] ss:$12 sps:$4 sm:$0xff]   ;;  %v2435_v30 = vld [vmem:[#allocation3 + $0x1b8] ss:$12 sps:$4 sm:$0xff]  }
 0x13e   :  { %v500_v33 = vadd.f32 %v2739_v57, %v499_v32  ;;  %2288 = vmatprep.subr.bf16.mxu0 %v711_v29  ;;  %1245 = vmatprep.mubr.bf16.mxu1 %v2366_v28  ;;  %v2413_v28 = vld [vmem:[#allocation3 + $0x13c] ss:$12 sps:$4 sm:$0xff]   ;;  %v2416_v32 = vld [vmem:[#allocation3 + $0x154] ss:$12 sps:$4 sm:$0xff]  }
 0x13f   :  { %2289 = vmatpush3.bf16.msra.mxu0 %v711_v29  ;;  %v2428_v29 = vld [vmem:[#allocation3 + $0x1a0] ss:$12 sps:$4 sm:$0xff]  }
 0x140   :  { %v712_v34 = vpack.c.bf16 %v505_v31, %v500_v33  ;;  %v2274_v35 = vpop.f32.mrb[40].mxu0  ;;  %v2415_v31 = vld [vmem:[#allocation3 + $0x138] ss:$12 sps:$4 sm:$0xff]   ;;  %v2436_v33 = vld [vmem:[#allocation3 + $0x1d0] ss:$12 sps:$4 sm:$0xff]  }
 0x141   :  { %v515_v36 = vadd.f32 %v2274_v35, %v2739_v57  ;;  %v509_v37 = vpop.f32.mrb[41].mxu0  ;;  %v2418_v35 = vld [vmem:[#allocation3 + $0x150] ss:$12 sps:$4 sm:$0xff]  }
 0x142   :  { %v510_v39 = vadd.f32 %v2739_v57, %v509_v37  ;;  %2290 = vmatprep.subr.bf16.mxu0 %v712_v34  ;;  %v2444_v37 = vld [vmem:[#allocation3 + $0x200] ss:$12 sps:$4 sm:$0xff]  }
 0x143   :  { %2291 = vmatpush3.bf16.msra.mxu0 %v712_v34  ;;  %v2443_v34 = vld [vmem:[#allocation3 + $0x1e8] ss:$12 sps:$4 sm:$0xff]  }
 0x144   :  { %v713_v41 = vpack.c.bf16 %v515_v36, %v510_v39  ;;  %v2277_v42 = vpop.f32.mrb[42].mxu0  ;;  %v2421_v36 = vld [vmem:[#allocation3 + $0x16c] ss:$12 sps:$4 sm:$0xff]   ;;  %v2423_v39 = vld [vmem:[#allocation3 + $0x168] ss:$12 sps:$4 sm:$0xff]  }
 0x145   :  { %v525_v43 = vadd.f32 %v2277_v42, %v2739_v57  ;;  %v519_v44 = vpop.f32.mrb[43].mxu0  ;;  %1246 = vmatmul.mubr.bf16.gmra.mrb[8].mxu1 %v2368_v38  ;;  %v2451_v38 = vld [vmem:[#allocation3 + $0x218] ss:$12 sps:$4 sm:$0xff]   ;;  %v2426_v42 = vld [vmem:[#allocation3 + $0x180] ss:$12 sps:$4 sm:$0xff]  }
 0x146   :  { %v520_v45 = vadd.f32 %v2739_v57, %v519_v44  ;;  %2292 = vmatprep.subr.bf16.mxu0 %v713_v41  ;;  %1253 = vmatprep.mubr.bf16.mxu1 %v2369_v40  ;;  %v2424_v40 = vld [vmem:[#allocation3 + $0x184] ss:$12 sps:$4 sm:$0xff]  }
 0x147   :  { %2293 = vmatpush3.bf16.msra.mxu0 %v713_v41  ;;  %v2452_v41 = vld [vmem:[#allocation3 + $0x230] ss:$12 sps:$4 sm:$0xff]   ;;  %v2431_v44 = vld [vmem:[#allocation3 + $0x198] ss:$12 sps:$4 sm:$0xff]  }
 0x148   :  { %v714_v46 = vpack.c.bf16 %v525_v43, %v520_v45  ;;  %v2280_v47 = vpop.f32.mrb[44].mxu0  ;;  %v2429_v43 = vld [vmem:[#allocation3 + $0x19c] ss:$12 sps:$4 sm:$0xff]   ;;  %v2432_v45 = vld [vmem:[#allocation3 + $0x1b4] ss:$12 sps:$4 sm:$0xff]  }
 0x149   :  { %v535_v48 = vadd.f32 %v2280_v47, %v2739_v57  ;;  %v529_v49 = vpop.f32.mrb[45].mxu0  ;;  %v2437_v47 = vld [vmem:[#allocation3 + $0x1cc] ss:$12 sps:$4 sm:$0xff]  }
 0x14a   :  { %v530_v51 = vadd.f32 %v2739_v57, %v529_v49  ;;  %2294 = vmatprep.subr.bf16.mxu0 %v714_v46  ;;  %v2440_v49 = vld [vmem:[#allocation3 + $0x1e4] ss:$12 sps:$4 sm:$0xff]  }
 0x14b   :  { %2295 = vmatpush3.bf16.msra.mxu0 %v714_v46  ;;  %v2434_v46 = vld [vmem:[#allocation3 + $0x1b0] ss:$12 sps:$4 sm:$0xff]  }
 0x14c   :  { %v715_v54 = vpack.c.bf16 %v535_v48, %v530_v51  ;;  %v2283_v55 = vpop.f32.mrb[46].mxu0  ;;  %v2439_v48 = vld [vmem:[#allocation3 + $0x1c8] ss:$12 sps:$4 sm:$0xff]  }
 0x14d   :  { %v545_v56 = vadd.f32 %v2283_v55, %v2739_v57  ;;  %v539_v58 = vpop.f32.mrb[47].mxu0  ;;  %1254 = vmatmul.mubr.bf16.gmra.mrb[12].mxu1 %v2371_v50  ;;  %v2442_v50 = vld [vmem:[#allocation3 + $0x1e0] ss:$12 sps:$4 sm:$0xff]   ;;  %v2445_v51 = vld [vmem:[#allocation3 + $0x1fc] ss:$12 sps:$4 sm:$0xff]  }
 0x14e   :  { %v540_v59 = vadd.f32 %v2739_v57, %v539_v58  ;;  %2296 = vmatprep.subr.bf16.mxu0 %v715_v54  ;;  %1261 = vmatprep.mubr.bf16.mxu1 %v2372_v52  ;;  %v2384_v57 = vld [vmem:[#allocation3 + $0x90] ss:$12 sps:$4 sm:$0xff]   ;;  %v2447_v52 = vld [vmem:[#allocation3 + $0x1f8] ss:$12 sps:$4 sm:$0xff]   ;;  %v2455_v58 = vld [vmem:[#allocation3 + $0x228] ss:$12 sps:$4 sm:$0xff]  }
 0x14f   :  { %2297 = vmatpush3.bf16.msra.mxu0 %v715_v54  ;;  %v2448_v54 = vld [vmem:[#allocation3 + $0x214] ss:$12 sps:$4 sm:$0xff]   ;;  %v2450_v55 = vld [vmem:[#allocation3 + $0x210] ss:$12 sps:$4 sm:$0xff]  }
 0x150   :  { %v716_v60 = vpack.c.bf16 %v545_v56, %v540_v59  ;;  %v2453_v56 = vld [vmem:[#allocation3 + $0x22c] ss:$12 sps:$4 sm:$0xff]  }
 0x152   :  { %2298 = vmatprep.subr.bf16.mxu0 %v716_v60 }
 0x153   :  { %2299 = vmatpush3.bf16.msra.mxu0 %v716_v60 }
 0x155   :  { %1262 = vmatmul.mubr.bf16.gmra.mrb[16].mxu1 %v2374_v61 }
 0x156   :  { %2301 = vmatmul.mubr.bf16.vlgmr.msra.gmra.mrb[48].mxu0 %v2376_v62  ;;  %1269 = vmatprep.mubr.bf16.mxu1 %v2377_v63 }
 0x157   :  { %2304 = vmatprep.mubr.bf16.mxu0 %v2380_v0 }
 0x15d   :  { %1270 = vmatmul.mubr.bf16.gmra.mrb[20].mxu1 %v2379_v1 }
 0x15e   :  { %2305 = vmatmul.mubr.bf16.gmra.mrb[52].mxu0 %v2381_v2  ;;  %1277 = vmatprep.mubr.bf16.mxu1 %v2382_v3 }
 0x15f   :  { %2308 = vmatprep.mubr.bf16.mxu0 %v2385_v4 }
 0x165   :  { %1278 = vmatmul.mubr.bf16.gmra.mrb[24].mxu1 %v2384_v57 }
 0x166   :  { %2309 = vmatmul.mubr.bf16.gmra.mrb[56].mxu0 %v2386_v5  ;;  %1285 = vmatprep.mubr.bf16.mxu1 %v2387_v6 }
 0x167   :  { %2312 = vmatprep.mubr.bf16.mxu0 %v2390_v7 }
 0x16d   :  { %1286 = vmatmul.mubr.bf16.gmra.mrb[28].mxu1 %v2389_v8 }
 0x16e   :  { %2313 = vmatmul.mubr.bf16.gmra.mrb[60].mxu0 %v2391_v9  ;;  %1293 = vmatprep.mubr.bf16.mxu1 %v2392_v10 }
 0x16f   :  { %2316 = vmatprep.mubr.bf16.mxu0 %v2395_v11 }
 0x175   :  { %1294 = vmatmul.mubr.bf16.gmra.mrb[32].mxu1 %v2394_v12 }
 0x176   :  { %2317 = vmatmul.mubr.bf16.gmra.mrb[64].mxu0 %v2396_v13  ;;  %1301 = vmatprep.mubr.bf16.mxu1 %v2397_v14 }
 0x177   :  { %2320 = vmatprep.mubr.bf16.mxu0 %v2403_v15 }
 0x17d   :  { %1302 = vmatmul.mubr.bf16.gmra.mrb[36].mxu1 %v2399_v16 }
 0x17e   :  { %1309 = vmatprep.mubr.bf16.mxu1 %v2400_v17  ;;  %2321 = vmatmul.mubr.bf16.gmra.mrb[68].mxu0 %v2404_v18 }
 0x17f   :  { %2324 = vmatprep.mubr.bf16.mxu0 %v2411_v19  ;;  %v2807_v19 = vld [vmem:[%s3208_s4] ss:$0 sm:$0xff] }
 0x185   :  { %1310 = vmatmul.mubr.bf16.gmra.mrb[40].mxu1 %v2402_v20 }
 0x186   :  { %1317 = vmatprep.mubr.bf16.mxu1 %v2405_v21  ;;  %2325 = vmatmul.mubr.bf16.gmra.mrb[72].mxu0 %v2412_v22 }
 0x187   :  { %2328 = vmatprep.mubr.bf16.mxu0 %v2419_v53 }
 0x18d   :  { %1318 = vmatmul.mubr.bf16.gmra.mrb[44].mxu1 %v2407_v23 }
 0x18e   :  { %1325 = vmatprep.mubr.bf16.mxu1 %v2408_v24  ;;  %2329 = vmatmul.mubr.bf16.gmra.mrb[76].mxu0 %v2420_v25 }
 0x18f   :  { %2332 = vmatprep.mubr.bf16.mxu0 %v2427_v26 }
 0x195   :  { %1326 = vmatmul.mubr.bf16.gmra.mrb[48].mxu1 %v2410_v27 }
 0x196   :  { %1333 = vmatprep.mubr.bf16.mxu1 %v2413_v28  ;;  %2333 = vmatmul.mubr.bf16.gmra.mrb[80].mxu0 %v2428_v29 }
 0x197   :  { %2336 = vmatprep.mubr.bf16.mxu0 %v2435_v30 }
 0x19d   :  { %1334 = vmatmul.mubr.bf16.gmra.mrb[52].mxu1 %v2415_v31 }
 0x19e   :  { %1341 = vmatprep.mubr.bf16.mxu1 %v2416_v32  ;;  %2337 = vmatmul.mubr.bf16.gmra.mrb[84].mxu0 %v2436_v33 }
 0x19f   :  { %2340 = vmatprep.mubr.bf16.mxu0 %v2443_v34 }
 0x1a5   :  { %1342 = vmatmul.mubr.bf16.gmra.mrb[56].mxu1 %v2418_v35 }
 0x1a6   :  { %1349 = vmatprep.mubr.bf16.mxu1 %v2421_v36  ;;  %2341 = vmatmul.mubr.bf16.gmra.mrb[88].mxu0 %v2444_v37 }
 0x1a7   :  { %2344 = vmatprep.mubr.bf16.mxu0 %v2451_v38 }
 0x1ad   :  { %1350 = vmatmul.mubr.bf16.gmra.mrb[60].mxu1 %v2423_v39 }
 0x1ae   :  { %1357 = vmatprep.mubr.bf16.mxu1 %v2424_v40  ;;  %2345 = vmatmul.mubr.bf16.gmra.mrb[92].mxu0 %v2452_v41 }
 0x1b5   :  { %1358 = vmatmul.mubr.bf16.gmra.mrb[64].mxu1 %v2426_v42 }
 0x1b6   :  { %1365 = vmatprep.mubr.bf16.mxu1 %v2429_v43 }
 0x1bd   :  { %1366 = vmatmul.mubr.bf16.gmra.mrb[68].mxu1 %v2431_v44 }
 0x1be   :  { %1373 = vmatprep.mubr.bf16.mxu1 %v2432_v45 }
 0x1c5   :  { %1374 = vmatmul.mubr.bf16.gmra.mrb[72].mxu1 %v2434_v46 }
 0x1c6   :  { %1381 = vmatprep.mubr.bf16.mxu1 %v2437_v47 }
 0x1cd   :  { %1382 = vmatmul.mubr.bf16.gmra.mrb[76].mxu1 %v2439_v48 }
 0x1ce   :  { %1389 = vmatprep.mubr.bf16.mxu1 %v2440_v49 }
 0x1d5   :  { %1390 = vmatmul.mubr.bf16.gmra.mrb[80].mxu1 %v2442_v50 }
 0x1d6   :  { %1397 = vmatprep.mubr.bf16.mxu1 %v2445_v51 }
 0x1dd   :  { %1398 = vmatmul.mubr.bf16.gmra.mrb[84].mxu1 %v2447_v52 }
 0x1de   :  { %1405 = vmatprep.mubr.bf16.mxu1 %v2448_v54 }
 0x1e5   :  { %1406 = vmatmul.mubr.bf16.gmra.mrb[88].mxu1 %v2450_v55 }
 0x1e6   :  { %1413 = vmatprep.mubr.bf16.mxu1 %v2453_v56 }
 0x1ed   :  { %1414 = vmatmul.mubr.bf16.gmra.mrb[92].mxu1 %v2455_v58 }
 0x208   :  { %v1231_v59 = vpop.f32.mrb[0].mxu1 }
 0x209   :  { %v1233_v60 = vpop.f32.mrb[1].mxu1 }
 0x20a   :  { %v1234_v61 = vpop.f32.mrb[2].mxu1 }
 0x20b   :  { %v1236_v62 = vpop.f32.mrb[3].mxu1 }
 0x210   :  { %v1239_v63 = vpop.f32.mrb[4].mxu1 }
 0x211   :  { %v1241_v0 = vpop.f32.mrb[5].mxu1 }
 0x212   :  { %v1242_v1 = vpop.f32.mrb[6].mxu1 }
 0x213   :  { %v1244_v2 = vpop.f32.mrb[7].mxu1 }
 0x218   :  { %v1247_v3 = vpop.f32.mrb[8].mxu1 }
 0x219   :  { %v1249_v4 = vpop.f32.mrb[9].mxu1 }
 0x21a   :  { %v1250_v57 = vpop.f32.mrb[10].mxu1 }
 0x21b   :  { %v1252_v5 = vpop.f32.mrb[11].mxu1 }
 0x220   :  { %v1255_v6 = vpop.f32.mrb[12].mxu1 }
 0x221   :  { %v1257_v7 = vpop.f32.mrb[13].mxu1 }
 0x222   :  { %v1258_v8 = vpop.f32.mrb[14].mxu1 }
 0x223   :  { %v1260_v9 = vpop.f32.mrb[15].mxu1 }
 0x228   :  { %v1263_v10 = vpop.f32.mrb[16].mxu1 }
 0x229   :  { %v2302_v11 = vpop.f32.mrb[48].mxu0  ;;  %v1265_v12 = vpop.f32.mrb[17].mxu1 }
 0x22a   :  { %v1465_v13 = vadd.f32 %v2302_v11, %v1239_v63  ;;  %v1456_v14 = vpop.f32.mrb[49].mxu0  ;;  %v1266_v15 = vpop.f32.mrb[18].mxu1 }
 0x22b   :  { %v1457_v16 = vadd.f32 %v1456_v14, %v1231_v59  ;;  %v2303_v17 = vpop.f32.mrb[50].mxu0  ;;  %v1268_v18 = vpop.f32.mrb[19].mxu1 }
 0x22c   :  { %v1649_v20 = vmax.f32 %v1465_v13, 0.0  ;;  %v1468_v21 = vadd.f32 %v2303_v17, %v1242_v1  ;;  %v1459_v22 = vpop.f32.mrb[51].mxu0 }
 0x22d   :  { %v1647_v53 = vmax.f32 %v1457_v16, 0.0  ;;  %v1460_v23 = vadd.f32 %v1459_v22, %v1234_v61 }
 0x22e   :  { %v1650_v24 = vmax.f32 %v1468_v21, 0.0  ;;  %v1704_v25 = vmul.f32 %v2807_v19, %v1649_v20 }
 0x22f   :  { %v1648_v26 = vmax.f32 %v1460_v23, 0.0  ;;  %v1702_v27 = vmul.f32 %v2807_v19, %v1647_v53 }
 0x230   :  { %v1756_v28 = vsel %vm98_vm0, %v1704_v25, 0.0  ;;  %v1271_v29 = vpop.f32.mrb[20].mxu1  ;;  %v1705_v30 = vmul.f32 %v2807_v19, %v1650_v24 }
 0x231   :  { %v2306_v31 = vpop.f32.mrb[52].mxu0  ;;  %1757 = vadd.xlane.f32.xlu1 %v1756_v28  ;;  %v1750_v32 = vsel %vm98_vm0, %v1702_v27, 0.0  ;;  %v1273_v33 = vpop.f32.mrb[21].mxu1  ;;  %v1703_v34 = vmul.f32 %v2807_v19, %v1648_v26 }
 0x232   :  { %v1481_v35 = vadd.f32 %v2306_v31, %v1255_v6  ;;  %v1472_v36 = vpop.f32.mrb[53].mxu0  ;;  %1751 = vadd.xlane.f32.xlu0 %v1750_v32  ;;  %v1274_v37 = vpop.f32.mrb[22].mxu1  ;;  %v1759_v44 = vsel %vm98_vm0, %v1705_v30, 0.0 }
 0x233   :  { %v1473_v38 = vadd.f32 %v1472_v36, %v1247_v3  ;;  %v2307_v39 = vpop.f32.mrb[54].mxu0  ;;  %v1276_v40 = vpop.f32.mrb[23].mxu1  ;;  %v1753_v47 = vsel %vm98_vm0, %v1703_v34, 0.0 }
 0x234   :  { %v1653_v41 = vmax.f32 %v1481_v35, 0.0  ;;  %v1484_v42 = vadd.f32 %v2307_v39, %v1258_v8  ;;  %v1475_v43 = vpop.f32.mrb[55].mxu0 }
 0x235   :  { %v1651_v45 = vmax.f32 %v1473_v38, 0.0  ;;  %v1476_v46 = vadd.f32 %v1475_v43, %v1250_v57  ;;  %1760 = vadd.xlane.f32.xlu1 %v1759_v44 }
 0x236   :  { %v1654_v48 = vmax.f32 %v1484_v42, 0.0  ;;  %1754 = vadd.xlane.f32.xlu0 %v1753_v47  ;;  %v1708_v49 = vmul.f32 %v2807_v19, %v1653_v41 }
 0x237   :  { %v1652_v50 = vmax.f32 %v1476_v46, 0.0  ;;  %v1706_v58 = vmul.f32 %v2807_v19, %v1651_v45 }
 0x238   :  { %v1768_v51 = vsel %vm98_vm0, %v1708_v49, 0.0  ;;  %v1709_v52 = vmul.f32 %v2807_v19, %v1654_v48  ;;  %v1279_v54 = vpop.f32.mrb[24].mxu1 }
 0x239   :  { %v2310_v55 = vpop.f32.mrb[56].mxu0  ;;  %v1281_v56 = vpop.f32.mrb[25].mxu1  ;;  %v1707_v63 = vmul.f32 %v2807_v19, %v1652_v50  ;;  %v1762_v7 = vsel %vm98_vm0, %v1706_v58, 0.0 }
 0x23a   :  { %v1497_v59 = vadd.f32 %v2310_v55, %v1271_v29  ;;  %v1488_v60 = vpop.f32.mrb[57].mxu0  ;;  %1769 = vadd.xlane.f32.xlu0 %v1768_v51  ;;  %v1771_v61 = vsel %vm98_vm0, %v1709_v52, 0.0  ;;  %v1282_v62 = vpop.f32.mrb[26].mxu1 }
 0x23b   :  { %v1489_v0 = vadd.f32 %v1488_v60, %v1263_v10  ;;  %v2311_v1 = vpop.f32.mrb[58].mxu0  ;;  %1772 = vadd.xlane.f32.xlu1 %v1771_v61  ;;  %v1284_v2 = vpop.f32.mrb[27].mxu1  ;;  %v1765_v9 = vsel %vm98_vm0, %v1707_v63, 0.0 }
 0x23c   :  { %v1657_v3 = vmax.f32 %v1497_v59, 0.0  ;;  %v1500_v4 = vadd.f32 %v2311_v1, %v1274_v37  ;;  %v1491_v57 = vpop.f32.mrb[59].mxu0 }
 0x23d   :  { %v1655_v5 = vmax.f32 %v1489_v0, 0.0  ;;  %v1492_v6 = vadd.f32 %v1491_v57, %v1266_v15 }
 0x23e   :  { %v1658_v8 = vmax.f32 %v1500_v4, 0.0  ;;  %1763 = vadd.xlane.f32.xlu0 %v1762_v7  ;;  %v1712_v11 = vmul.f32 %v2807_v19, %v1657_v3 }
 0x23f   :  { %v1656_v12 = vmax.f32 %v1492_v6, 0.0  ;;  %1766 = vadd.xlane.f32.xlu1 %v1765_v9  ;;  %v1710_v18 = vmul.f32 %v2807_v19, %v1655_v5 }
 0x240   :  { %v1287_v13 = vpop.f32.mrb[28].mxu1  ;;  %v1780_v10 = vsel %vm98_vm0, %v1712_v11, 0.0  ;;  %v1713_v14 = vmul.f32 %v2807_v19, %v1658_v8 }
 0x241   :  { %v2314_v16 = vpop.f32.mrb[60].mxu0  ;;  %v1289_v17 = vpop.f32.mrb[29].mxu1  ;;  %v1711_v53 = vmul.f32 %v2807_v19, %v1656_v12  ;;  %v1774_v31 = vsel %vm98_vm0, %v1710_v18, 0.0 }
 0x242   :  { %v1513_v15 = vadd.f32 %v2314_v16, %v1287_v13  ;;  %v1504_v20 = vpop.f32.mrb[61].mxu0  ;;  %1781 = vadd.xlane.f32.xlu0 %v1780_v10  ;;  %v1783_v21 = vsel %vm98_vm0, %v1713_v14, 0.0  ;;  %v1290_v22 = vpop.f32.mrb[30].mxu1 }
 0x243   :  { %v1505_v23 = vadd.f32 %v1504_v20, %v1279_v54  ;;  %v2315_v24 = vpop.f32.mrb[62].mxu0  ;;  %1784 = vadd.xlane.f32.xlu1 %v1783_v21  ;;  %v1292_v25 = vpop.f32.mrb[31].mxu1  ;;  %v1777_v33 = vsel %vm98_vm0, %v1711_v53, 0.0 }
 0x244   :  { %v1661_v26 = vmax.f32 %v1513_v15, 0.0  ;;  %v1516_v27 = vadd.f32 %v2315_v24, %v1290_v22  ;;  %v1507_v28 = vpop.f32.mrb[63].mxu0 }
 0x245   :  { %v1659_v29 = vmax.f32 %v1505_v23, 0.0  ;;  %v1508_v30 = vadd.f32 %v1507_v28, %v1282_v62 }
 0x246   :  { %v1662_v32 = vmax.f32 %v1516_v27, 0.0  ;;  %1775 = vadd.xlane.f32.xlu0 %v1774_v31  ;;  %v1716_v34 = vmul.f32 %v2807_v19, %v1661_v26 }
 0x247   :  { %v1660_v35 = vmax.f32 %v1508_v30, 0.0  ;;  %1778 = vadd.xlane.f32.xlu1 %v1777_v33  ;;  %v1714_v41 = vmul.f32 %v2807_v19, %v1659_v29 }
 0x248   :  { %v1792_v36 = vsel %vm98_vm0, %v1716_v34, 0.0  ;;  %v1717_v37 = vmul.f32 %v2807_v19, %v1662_v32  ;;  %v1295_v38 = vpop.f32.mrb[32].mxu1 }
 0x249   :  { %v2318_v39 = vpop.f32.mrb[64].mxu0  ;;  %v1297_v40 = vpop.f32.mrb[33].mxu1  ;;  %v1715_v45 = vmul.f32 %v2807_v19, %v1660_v35  ;;  %v1786_v51 = vsel %vm98_vm0, %v1714_v41, 0.0 }
 0x24a   :  { %1793 = vadd.xlane.f32.xlu0 %v1792_v36  ;;  %v1795_v42 = vsel %vm98_vm0, %v1717_v37, 0.0  ;;  %v1520_v43 = vpop.f32.mrb[65].mxu0  ;;  %v1298_v44 = vpop.f32.mrb[34].mxu1 }
 0x24b   :  { %1796 = vadd.xlane.f32.xlu1 %v1795_v42  ;;  %v1521_v46 = vadd.f32 %v1520_v43, %v1295_v38  ;;  %v2319_v47 = vpop.f32.mrb[66].mxu0  ;;  %v1300_v48 = vpop.f32.mrb[35].mxu1  ;;  %v1789_v54 = vsel %vm98_vm0, %v1715_v45, 0.0 }
 0x24c   :  { %v1523_v49 = vpop.f32.mrb[67].mxu0 }
 0x24d   :  { %v1663_v50 = vmax.f32 %v1521_v46, 0.0  ;;  %v1524_v52 = vadd.f32 %v1523_v49, %v1298_v44 }
 0x24e   :  { %1787 = vadd.xlane.f32.xlu0 %v1786_v51 }
 0x24f   :  { %v1664_v55 = vmax.f32 %v1524_v52, 0.0  ;;  %1790 = vadd.xlane.f32.xlu1 %v1789_v54  ;;  %v1718_v56 = vmul.f32 %v2807_v19, %v1663_v50 }
 0x250   :  { %v1303_v58 = vpop.f32.mrb[36].mxu1 }
 0x251   :  { %v1529_v59 = vadd.f32 %v2318_v39, %v1303_v58  ;;  %v1305_v60 = vpop.f32.mrb[37].mxu1  ;;  %v1798_v61 = vsel %vm98_vm0, %v1718_v56, 0.0  ;;  %v1719_v62 = vmul.f32 %v2807_v19, %v1664_v55  ;;  %v2322_v63 = vpop.f32.mrb[68].mxu0 }
 0x252   :  { %v1306_v0 = vpop.f32.mrb[38].mxu1  ;;  %1799 = vadd.xlane.f32.xlu0 %v1798_v61  ;;  %v1536_v1 = vpop.f32.mrb[69].mxu0 }
 0x253   :  { %v1665_v2 = vmax.f32 %v1529_v59, 0.0  ;;  %v1532_v3 = vadd.f32 %v2319_v47, %v1306_v0  ;;  %v1801_v4 = vsel %vm98_vm0, %v1719_v62, 0.0  ;;  %v1308_v57 = vpop.f32.mrb[39].mxu1  ;;  %v2323_v5 = vpop.f32.mrb[70].mxu0 }
 0x254   :  { %1802 = vadd.xlane.f32.xlu1 %v1801_v4  ;;  %v1539_v6 = vpop.f32.mrb[71].mxu0 }
 0x255   :  { %v1666_v7 = vmax.f32 %v1532_v3, 0.0  ;;  %v1720_v8 = vmul.f32 %v2807_v19, %v1665_v2 }
 0x257   :  { %v1804_v9 = vsel %vm98_vm0, %v1720_v8, 0.0  ;;  %v1721_v11 = vmul.f32 %v2807_v19, %v1666_v7 }
 0x258   :  { %v1311_v12 = vpop.f32.mrb[40].mxu1  ;;  %1805 = vadd.xlane.f32.xlu0 %v1804_v9 }
 0x259   :  { %v1313_v13 = vpop.f32.mrb[41].mxu1  ;;  %v1537_v10 = vadd.f32 %v1536_v1, %v1311_v12  ;;  %v1807_v14 = vsel %vm98_vm0, %v1721_v11, 0.0  ;;  %v2326_v16 = vpop.f32.mrb[72].mxu0 }
 0x25a   :  { %v1314_v17 = vpop.f32.mrb[42].mxu1  ;;  %1808 = vadd.xlane.f32.xlu1 %v1807_v14  ;;  %v1552_v18 = vpop.f32.mrb[73].mxu0 }
 0x25b   :  { %v1667_v15 = vmax.f32 %v1537_v10, 0.0  ;;  %v1540_v20 = vadd.f32 %v1539_v6, %v1314_v17  ;;  %v1316_v21 = vpop.f32.mrb[43].mxu1  ;;  %v2327_v22 = vpop.f32.mrb[74].mxu0 }
 0x25c   :  { %v1555_v53 = vpop.f32.mrb[75].mxu0 }
 0x25d   :  { %v1668_v23 = vmax.f32 %v1540_v20, 0.0  ;;  %v1722_v24 = vmul.f32 %v2807_v19, %v1667_v15 }
 0x25f   :  { %v1810_v25 = vsel %vm98_vm0, %v1722_v24, 0.0  ;;  %v1723_v26 = vmul.f32 %v2807_v19, %v1668_v23 }
 0x260   :  { %v1319_v27 = vpop.f32.mrb[44].mxu1  ;;  %1811 = vadd.xlane.f32.xlu0 %v1810_v25 }
 0x261   :  { %v1545_v28 = vadd.f32 %v2322_v63, %v1319_v27  ;;  %v1321_v29 = vpop.f32.mrb[45].mxu1  ;;  %v1813_v30 = vsel %vm98_vm0, %v1723_v26, 0.0  ;;  %v2853_v31 = vpop.f32.mrb[76].mxu0 }
 0x262   :  { %v1322_v32 = vpop.f32.mrb[46].mxu1  ;;  %1814 = vadd.xlane.f32.xlu1 %v1813_v30  ;;  %v1568_v33 = vpop.f32.mrb[77].mxu0 }
 0x263   :  { %v1669_v34 = vmax.f32 %v1545_v28, 0.0  ;;  %v1548_v35 = vadd.f32 %v2323_v5, %v1322_v32  ;;  %v1324_v36 = vpop.f32.mrb[47].mxu1  ;;  %v2855_v37 = vpop.f32.mrb[78].mxu0 }
 0x264   :  { %v1571_v38 = vpop.f32.mrb[79].mxu0 }
 0x265   :  { %v1670_v39 = vmax.f32 %v1548_v35, 0.0  ;;  %v1724_v40 = vmul.f32 %v2807_v19, %v1669_v34 }
 0x267   :  { %v1816_v41 = vsel %vm98_vm0, %v1724_v40, 0.0  ;;  %v1725_v42 = vmul.f32 %v2807_v19, %v1670_v39 }
 0x268   :  { %v1327_v43 = vpop.f32.mrb[48].mxu1  ;;  %1817 = vadd.xlane.f32.xlu0 %v1816_v41 }
 0x269   :  { %v1329_v44 = vpop.f32.mrb[49].mxu1  ;;  %v1553_v45 = vadd.f32 %v1552_v18, %v1327_v43  ;;  %v1819_v46 = vsel %vm98_vm0, %v1725_v42, 0.0  ;;  %v2861_v47 = vpop.f32.mrb[80].mxu0 }
 0x26a   :  { %v1330_v48 = vpop.f32.mrb[50].mxu1  ;;  %1820 = vadd.xlane.f32.xlu1 %v1819_v46  ;;  %v2863_v49 = vpop.f32.mrb[81].mxu0 }
 0x26b   :  { %v1671_v50 = vmax.f32 %v1553_v45, 0.0  ;;  %v1556_v51 = vadd.f32 %v1555_v53, %v1330_v48  ;;  %v1332_v52 = vpop.f32.mrb[51].mxu1  ;;  %v2865_v54 = vpop.f32.mrb[82].mxu0 }
 0x26c   :  { %v2867_v55 = vpop.f32.mrb[83].mxu0 }
 0x26d   :  { %v1672_v56 = vmax.f32 %v1556_v51, 0.0  ;;  %v1726_v58 = vmul.f32 %v2807_v19, %v1671_v50 }
 0x26f   :  { %v1822_v59 = vsel %vm98_vm0, %v1726_v58, 0.0  ;;  %v1727_v60 = vmul.f32 %v2807_v19, %v1672_v56 }
 0x270   :  { %v1335_v61 = vpop.f32.mrb[52].mxu1  ;;  %1823 = vadd.xlane.f32.xlu0 %v1822_v59 }
 0x271   :  { %v1561_v62 = vadd.f32 %v2326_v16, %v1335_v61  ;;  %v1337_v63 = vpop.f32.mrb[53].mxu1  ;;  %v1825_v0 = vsel %vm98_vm0, %v1727_v60, 0.0  ;;  %v2873_v1 = vpop.f32.mrb[84].mxu0 }
 0x272   :  { %v1338_v2 = vpop.f32.mrb[54].mxu1  ;;  %1826 = vadd.xlane.f32.xlu1 %v1825_v0  ;;  %v2875_v3 = vpop.f32.mrb[85].mxu0 }
 0x273   :  { %v1673_v4 = vmax.f32 %v1561_v62, 0.0  ;;  %v1564_v57 = vadd.f32 %v2327_v22, %v1338_v2  ;;  %v1340_v5 = vpop.f32.mrb[55].mxu1  ;;  %v2877_v6 = vpop.f32.mrb[86].mxu0 }
 0x274   :  { %v2879_v7 = vpop.f32.mrb[87].mxu0 }
 0x275   :  { %v1674_v8 = vmax.f32 %v1564_v57, 0.0  ;;  %v1728_v9 = vmul.f32 %v2807_v19, %v1673_v4 }
 0x277   :  { %v1828_v11 = vsel %vm98_vm0, %v1728_v9, 0.0  ;;  %v1729_v12 = vmul.f32 %v2807_v19, %v1674_v8 }
 0x278   :  { %v1343_v13 = vpop.f32.mrb[56].mxu1  ;;  %1829 = vadd.xlane.f32.xlu0 %v1828_v11 }
 0x279   :  { %v1345_v10 = vpop.f32.mrb[57].mxu1  ;;  %v1569_v14 = vadd.f32 %v1568_v33, %v1343_v13  ;;  %v1831_v16 = vsel %vm98_vm0, %v1729_v12, 0.0  ;;  %v2885_v17 = vpop.f32.mrb[88].mxu0 }
 0x27a   :  { %v1346_v18 = vpop.f32.mrb[58].mxu1  ;;  %1832 = vadd.xlane.f32.xlu1 %v1831_v16  ;;  %v2887_v15 = vpop.f32.mrb[89].mxu0 }
 0x27b   :  { %v1675_v20 = vmax.f32 %v1569_v14, 0.0  ;;  %v1572_v21 = vadd.f32 %v1571_v38, %v1346_v18  ;;  %v1348_v22 = vpop.f32.mrb[59].mxu1  ;;  %v2889_v53 = vpop.f32.mrb[90].mxu0 }
 0x27c   :  { %v2891_v23 = vpop.f32.mrb[91].mxu0 }
 0x27d   :  { %v1676_v24 = vmax.f32 %v1572_v21, 0.0  ;;  %v1730_v25 = vmul.f32 %v2807_v19, %v1675_v20 }
 0x27f   :  { %v1834_v26 = vsel %vm98_vm0, %v1730_v25, 0.0  ;;  %v1731_v27 = vmul.f32 %v2807_v19, %v1676_v24 }
 0x280   :  { %v1351_v28 = vpop.f32.mrb[60].mxu1  ;;  %1835 = vadd.xlane.f32.xlu0 %v1834_v26 }
 0x281   :  { %v1577_v29 = vadd.f32 %v2853_v31, %v1351_v28  ;;  %v1353_v30 = vpop.f32.mrb[61].mxu1  ;;  %v1837_v32 = vsel %vm98_vm0, %v1731_v27, 0.0  ;;  %v2898_v33 = vpop.f32.mrb[92].mxu0 }
 0x282   :  { %v1354_v34 = vpop.f32.mrb[62].mxu1  ;;  %1838 = vadd.xlane.f32.xlu1 %v1837_v32  ;;  %v2900_v35 = vpop.f32.mrb[93].mxu0 }
 0x283   :  { %v1677_v36 = vmax.f32 %v1577_v29, 0.0  ;;  %v1580_v38 = vadd.f32 %v2855_v37, %v1354_v34  ;;  %v1356_v39 = vpop.f32.mrb[63].mxu1  ;;  %v2903_v40 = vpop.f32.mrb[94].mxu0 }
 0x284   :  { %v2905_v41 = vpop.f32.mrb[95].mxu0 }
 0x285   :  { %v1678_v42 = vmax.f32 %v1580_v38, 0.0  ;;  %v1732_v31 = vmul.f32 %v2807_v19, %v1677_v36 }
 0x287   :  { %v1840_v43 = vsel %vm98_vm0, %v1732_v31, 0.0  ;;  %v1733_v44 = vmul.f32 %v2807_v19, %v1678_v42 }
 0x288   :  { %v1359_v45 = vpop.f32.mrb[64].mxu1  ;;  %1841 = vadd.xlane.f32.xlu0 %v1840_v43 }
 0x289   :  { %v1361_v46 = vpop.f32.mrb[65].mxu1  ;;  %v1585_v48 = vadd.f32 %v2863_v49, %v1359_v45  ;;  %v1843_v50 = vsel %vm98_vm0, %v1733_v44, 0.0 }
 0x28a   :  { %v1362_v37 = vpop.f32.mrb[66].mxu1  ;;  %1844 = vadd.xlane.f32.xlu1 %v1843_v50 }
 0x28b   :  { %v1679_v51 = vmax.f32 %v1585_v48, 0.0  ;;  %v1588_v52 = vadd.f32 %v2867_v55, %v1362_v37  ;;  %v1364_v56 = vpop.f32.mrb[67].mxu1 }
 0x28d   :  { %v1680_v58 = vmax.f32 %v1588_v52, 0.0  ;;  %v1734_v59 = vmul.f32 %v2807_v19, %v1679_v51 }
 0x28f   :  { %v1846_v60 = vsel %vm98_vm0, %v1734_v59, 0.0  ;;  %v1735_v61 = vmul.f32 %v2807_v19, %v1680_v58 }
 0x290   :  { %v1367_v62 = vpop.f32.mrb[68].mxu1  ;;  %1847 = vadd.xlane.f32.xlu0 %v1846_v60 }
 0x291   :  { %v1593_v63 = vadd.f32 %v2861_v47, %v1367_v62  ;;  %v1369_v49 = vpop.f32.mrb[69].mxu1  ;;  %v1849_v0 = vsel %vm98_vm0, %v1735_v61, 0.0 }
 0x292   :  { %v1370_v2 = vpop.f32.mrb[70].mxu1  ;;  %1850 = vadd.xlane.f32.xlu1 %v1849_v0 }
 0x293   :  { %v1681_v4 = vmax.f32 %v1593_v63, 0.0  ;;  %v1596_v55 = vadd.f32 %v2865_v54, %v1370_v2  ;;  %v1372_v57 = vpop.f32.mrb[71].mxu1 }
 0x295   :  { %v1682_v5 = vmax.f32 %v1596_v55, 0.0  ;;  %v1736_v8 = vmul.f32 %v2807_v19, %v1681_v4 }
 0x297   :  { %v1852_v9 = vsel %vm98_vm0, %v1736_v8, 0.0  ;;  %v1737_v11 = vmul.f32 %v2807_v19, %v1682_v5  ;;  %v2952_v8 = vstv %s3209_s5 }
 0x298   :  { %v1375_v12 = vpop.f32.mrb[72].mxu1  ;;  %1853 = vadd.xlane.f32.xlu0 %v1852_v9 }
 0x299   :  { %v1377_v13 = vpop.f32.mrb[73].mxu1  ;;  %v1601_v47 = vadd.f32 %v2875_v3, %v1375_v12  ;;  %v1855_v10 = vsel %vm98_vm0, %v1737_v11, 0.0 }
 0x29a   :  { %v1378_v14 = vpop.f32.mrb[74].mxu1  ;;  %1856 = vadd.xlane.f32.xlu1 %v1855_v10 }
 0x29b   :  { %v1683_v16 = vmax.f32 %v1601_v47, 0.0  ;;  %v1604_v54 = vadd.f32 %v2879_v7, %v1378_v14  ;;  %v1380_v18 = vpop.f32.mrb[75].mxu1 }
 0x29d   :  { %v1684_v20 = vmax.f32 %v1604_v54, 0.0  ;;  %v1738_v21 = vmul.f32 %v2807_v19, %v1683_v16 }
 0x29f   :  { %v1858_v22 = vsel %vm98_vm0, %v1738_v21, 0.0  ;;  %v1739_v24 = vmul.f32 %v2807_v19, %v1684_v20 }
 0x2a0   :  { %v1383_v25 = vpop.f32.mrb[76].mxu1  ;;  %1859 = vadd.xlane.f32.xlu0 %v1858_v22 }
 0x2a1   :  { %v1609_v26 = vadd.f32 %v2873_v1, %v1383_v25  ;;  %v1385_v3 = vpop.f32.mrb[77].mxu1  ;;  %v1861_v27 = vsel %vm98_vm0, %v1739_v24, 0.0 }
 0x2a2   :  { %v1386_v28 = vpop.f32.mrb[78].mxu1  ;;  %1862 = vadd.xlane.f32.xlu1 %v1861_v27 }
 0x2a3   :  { %v1685_v29 = vmax.f32 %v1609_v26, 0.0  ;;  %v1612_v7 = vadd.f32 %v2877_v6, %v1386_v28  ;;  %v1388_v30 = vpop.f32.mrb[79].mxu1 }
 0x2a5   :  { %v1686_v32 = vmax.f32 %v1612_v7, 0.0  ;;  %v1740_v34 = vmul.f32 %v2807_v19, %v1685_v29 }
 0x2a7   :  { %v1864_v36 = vsel %vm98_vm0, %v1740_v34, 0.0  ;;  %v1741_v38 = vmul.f32 %v2807_v19, %v1686_v32 }
 0x2a8   :  { %v1391_v39 = vpop.f32.mrb[80].mxu1  ;;  %1865 = vadd.xlane.f32.xlu0 %v1864_v36 }
 0x2a9   :  { %v1393_v42 = vpop.f32.mrb[81].mxu1  ;;  %v1617_v1 = vadd.f32 %v2887_v15, %v1391_v39  ;;  %v1867_v31 = vsel %vm98_vm0, %v1741_v38, 0.0 }
 0x2aa   :  { %v1394_v43 = vpop.f32.mrb[82].mxu1  ;;  %1868 = vadd.xlane.f32.xlu1 %v1867_v31 }
 0x2ab   :  { %v1687_v44 = vmax.f32 %v1617_v1, 0.0  ;;  %v1620_v6 = vadd.f32 %v2891_v23, %v1394_v43  ;;  %v1396_v45 = vpop.f32.mrb[83].mxu1 }
 0x2ad   :  { %v1688_v46 = vmax.f32 %v1620_v6, 0.0  ;;  %v1742_v48 = vmul.f32 %v2807_v19, %v1687_v44 }
 0x2af   :  { %v1870_v50 = vsel %vm98_vm0, %v1742_v48, 0.0  ;;  %v1743_v37 = vmul.f32 %v2807_v19, %v1688_v46 }
 0x2b0   :  { %v1399_v51 = vpop.f32.mrb[84].mxu1  ;;  %1871 = vadd.xlane.f32.xlu0 %v1870_v50 }
 0x2b1   :  { %v1625_v52 = vadd.f32 %v2885_v17, %v1399_v51  ;;  %v1401_v15 = vpop.f32.mrb[85].mxu1  ;;  %v1873_v56 = vsel %vm98_vm0, %v1743_v37, 0.0 }
 0x2b2   :  { %v1402_v58 = vpop.f32.mrb[86].mxu1  ;;  %1874 = vadd.xlane.f32.xlu1 %v1873_v56 }
 0x2b3   :  { %v1689_v59 = vmax.f32 %v1625_v52, 0.0  ;;  %v1628_v23 = vadd.f32 %v2889_v53, %v1402_v58  ;;  %v1404_v60 = vpop.f32.mrb[87].mxu1 }
 0x2b5   :  { %v1690_v61 = vmax.f32 %v1628_v23, 0.0  ;;  %v1744_v62 = vmul.f32 %v2807_v19, %v1689_v59 }
 0x2b7   :  { %v1876_v63 = vsel %vm98_vm0, %v1744_v62, 0.0  ;;  %v1745_v49 = vmul.f32 %v2807_v19, %v1690_v61 }
 0x2b8   :  { %v1407_v0 = vpop.f32.mrb[88].mxu1  ;;  %1877 = vadd.xlane.f32.xlu0 %v1876_v63 }
 0x2b9   :  { %v1633_v17 = vadd.f32 %v2900_v35, %v1407_v0  ;;  %v1409_v2 = vpop.f32.mrb[89].mxu1  ;;  %v1879_v4 = vsel %vm98_vm0, %v1745_v49, 0.0 }
 0x2ba   :  { %v1410_v55 = vpop.f32.mrb[90].mxu1  ;;  %1880 = vadd.xlane.f32.xlu1 %v1879_v4 }
 0x2bb   :  { %v1691_v57 = vmax.f32 %v1633_v17, 0.0  ;;  %v1636_v53 = vadd.f32 %v2905_v41, %v1410_v55  ;;  %v1412_v5 = vpop.f32.mrb[91].mxu1 }
 0x2bd   :  { %v1692_v9 = vmax.f32 %v1636_v53, 0.0  ;;  %v1746_v11 = vmul.f32 %v2807_v19, %v1691_v57 }
 0x2be   :  { %v1758_v12 = vpop.xlane.xlu1 %1757 }
 0x2bf   :  { %v1898_v35 = vadd.f32 %v2952_v8, %v1758_v12  ;;  %v1752_v13 = vpop.xlane.xlu0 %1751  ;;  %v1882_v47 = vsel %vm98_vm0, %v1746_v11, 0.0  ;;  %v1747_v10 = vmul.f32 %v2807_v19, %v1692_v9 }
 0x2c0   :  { %v1896_v41 = vadd.f32 %v2952_v8, %v1752_v13  ;;  %v1415_v14 = vpop.f32.mrb[92].mxu1  ;;  %1883 = vadd.xlane.f32.xlu0 %v1882_v47 }
 0x2c1   :  { %1947 = vst.msk [vmem:[%s3210_s6 + $0x10] sm:$0xff] %vm1944_vm1, %v1898_v35  ;;  %v1641_v16 = vadd.f32 %v2898_v33, %v1415_v14  ;;  %v1417_v54 = vpop.f32.mrb[93].mxu1  ;;  %v1885_v18 = vsel %vm98_vm0, %v1747_v10, 0.0 }
 0x2c2   :  { %1945 = vst.msk [vmem:[%s3210_s6] sm:$0xff] %vm1944_vm1, %v1896_v41  ;;  %v1761_v20 = vpop.xlane.xlu1 %1760  ;;  %v1418_v21 = vpop.f32.mrb[94].mxu1  ;;  %1886 = vadd.xlane.f32.xlu1 %v1885_v18 }
 0x2c3   :  { %v1693_v22 = vmax.f32 %v1641_v16, 0.0  ;;  %v1899_v24 = vadd.f32 %v2952_v8, %v1761_v20  ;;  %v1644_v25 = vadd.f32 %v2903_v40, %v1418_v21  ;;  %v1755_v26 = vpop.xlane.xlu0 %1754  ;;  %v1420_v3 = vpop.f32.mrb[95].mxu1 }
 0x2c4   :  { %v1897_v33 = vadd.f32 %v2952_v8, %v1755_v26 }
 0x2c5   :  { %1948 = vst.msk [vmem:[%s3210_s6 + $0x18] sm:$0xff] %vm1944_vm1, %v1899_v24  ;;  %v1694_v27 = vmax.f32 %v1644_v25, 0.0  ;;  %v1748_v28 = vmul.f32 %v2807_v19, %v1693_v22 }
 0x2c6   :  { %1946 = vst.msk [vmem:[%s3210_s6 + $0x8] sm:$0xff] %vm1944_vm1, %v1897_v33 }
 0x2c7   :  { %v1770_v29 = vpop.xlane.xlu0 %1769  ;;  %v1888_v40 = vsel %vm98_vm0, %v1748_v28, 0.0  ;;  %v1749_v7 = vmul.f32 %v2807_v19, %v1694_v27 }
 0x2c8   :  { %v1902_v30 = vadd.f32 %v2952_v8, %v1770_v29  ;;  %v1773_v32 = vpop.xlane.xlu1 %1772  ;;  %1889 = vadd.xlane.f32.xlu0 %v1888_v40 }
 0x2c9   :  { %v1903_v34 = vadd.f32 %v2952_v8, %v1773_v32  ;;  %v1891_v36 = vsel %vm98_vm0, %v1749_v7, 0.0 }
 0x2ca   :  { %1951 = vst.msk [vmem:[%s3210_s6 + $0x30] sm:$0xff] %vm1944_vm1, %v1902_v30  ;;  %1892 = vadd.xlane.f32.xlu1 %v1891_v36 }
 0x2cb   :  { %1952 = vst.msk [vmem:[%s3210_s6 + $0x38] sm:$0xff] %vm1944_vm1, %v1903_v34  ;;  %v1764_v19 = vpop.xlane.xlu0 %1763 }
 0x2cc   :  { %v1900_v38 = vadd.f32 %v2952_v8, %v1764_v19  ;;  %v1767_v39 = vpop.xlane.xlu1 %1766 }
 0x2cd   :  { %v1901_v42 = vadd.f32 %v2952_v8, %v1767_v39 }
 0x2ce   :  { %1949 = vst.msk [vmem:[%s3210_s6 + $0x20] sm:$0xff] %vm1944_vm1, %v1900_v38 }
 0x2cf   :  { %1950 = vst.msk [vmem:[%s3210_s6 + $0x28] sm:$0xff] %vm1944_vm1, %v1901_v42  ;;  %v1782_v1 = vpop.xlane.xlu0 %1781 }
 0x2d0   :  { %v1906_v31 = vadd.f32 %v2952_v8, %v1782_v1  ;;  %v1785_v43 = vpop.xlane.xlu1 %1784 }
 0x2d1   :  { %v1907_v44 = vadd.f32 %v2952_v8, %v1785_v43 }
 0x2d2   :  { %1955 = vst.msk [vmem:[%s3210_s6 + $0x50] sm:$0xff] %vm1944_vm1, %v1906_v31 }
 0x2d3   :  { %1956 = vst.msk [vmem:[%s3210_s6 + $0x58] sm:$0xff] %vm1944_vm1, %v1907_v44  ;;  %v1776_v6 = vpop.xlane.xlu0 %1775 }
 0x2d4   :  { %v1904_v45 = vadd.f32 %v2952_v8, %v1776_v6  ;;  %v1779_v46 = vpop.xlane.xlu1 %1778 }
 0x2d5   :  { %v1905_v48 = vadd.f32 %v2952_v8, %v1779_v46 }
 0x2d6   :  { %1953 = vst.msk [vmem:[%s3210_s6 + $0x40] sm:$0xff] %vm1944_vm1, %v1904_v45 }
 0x2d7   :  { %1954 = vst.msk [vmem:[%s3210_s6 + $0x48] sm:$0xff] %vm1944_vm1, %v1905_v48  ;;  %v1794_v50 = vpop.xlane.xlu0 %1793 }
 0x2d8   :  { %v1910_v37 = vadd.f32 %v2952_v8, %v1794_v50  ;;  %v1797_v51 = vpop.xlane.xlu1 %1796 }
 0x2d9   :  { %v1911_v52 = vadd.f32 %v2952_v8, %v1797_v51 }
 0x2da   :  { %1959 = vst.msk [vmem:[%s3210_s6 + $0x70] sm:$0xff] %vm1944_vm1, %v1910_v37 }
 0x2db   :  { %1960 = vst.msk [vmem:[%s3210_s6 + $0x78] sm:$0xff] %vm1944_vm1, %v1911_v52  ;;  %v1788_v15 = vpop.xlane.xlu0 %1787 }
 0x2dc   :  { %v1908_v56 = vadd.f32 %v2952_v8, %v1788_v15  ;;  %v1791_v58 = vpop.xlane.xlu1 %1790 }
 0x2dd   :  { %v1909_v59 = vadd.f32 %v2952_v8, %v1791_v58 }
 0x2de   :  { %1957 = vst.msk [vmem:[%s3210_s6 + $0x60] sm:$0xff] %vm1944_vm1, %v1908_v56 }
 0x2df   :  { %1958 = vst.msk [vmem:[%s3210_s6 + $0x68] sm:$0xff] %vm1944_vm1, %v1909_v59  ;;  %v1800_v23 = vpop.xlane.xlu0 %1799 }
 0x2e0   :  { %v1912_v60 = vadd.f32 %v2952_v8, %v1800_v23 }
 0x2e1   :  { %v1803_v61 = vpop.xlane.xlu1 %1802 }
 0x2e2   :  { %1961 = vst.msk [vmem:[%s3210_s6 + $0x80] sm:$0xff] %vm1944_vm1, %v1912_v60  ;;  %v1913_v62 = vadd.f32 %v2952_v8, %v1803_v61 }
 0x2e4   :  { %1962 = vst.msk [vmem:[%s3210_s6 + $0x88] sm:$0xff] %vm1944_vm1, %v1913_v62 }
 0x2e5   :  { %v1806_v63 = vpop.xlane.xlu0 %1805 }
 0x2e6   :  { %v1914_v49 = vadd.f32 %v2952_v8, %v1806_v63 }
 0x2e7   :  { %v1809_v0 = vpop.xlane.xlu1 %1808 }
 0x2e8   :  { %1963 = vst.msk [vmem:[%s3210_s6 + $0x90] sm:$0xff] %vm1944_vm1, %v1914_v49  ;;  %v1915_v17 = vadd.f32 %v2952_v8, %v1809_v0 }
 0x2ea   :  { %1964 = vst.msk [vmem:[%s3210_s6 + $0x98] sm:$0xff] %vm1944_vm1, %v1915_v17 }
 0x2ed   :  { %v1812_v2 = vpop.xlane.xlu0 %1811 }
 0x2ee   :  { %v1916_v4 = vadd.f32 %v2952_v8, %v1812_v2 }
 0x2ef   :  { %v1815_v55 = vpop.xlane.xlu1 %1814 }
 0x2f0   :  { %1965 = vst.msk [vmem:[%s3210_s6 + $0xa0] sm:$0xff] %vm1944_vm1, %v1916_v4  ;;  %v1917_v57 = vadd.f32 %v2952_v8, %v1815_v55 }
 0x2f2   :  { %1966 = vst.msk [vmem:[%s3210_s6 + $0xa8] sm:$0xff] %vm1944_vm1, %v1917_v57 }
 0x2f5   :  { %v1818_v53 = vpop.xlane.xlu0 %1817 }
 0x2f6   :  { %v1918_v5 = vadd.f32 %v2952_v8, %v1818_v53 }
 0x2f7   :  { %v1821_v9 = vpop.xlane.xlu1 %1820 }
 0x2f8   :  { %1967 = vst.msk [vmem:[%s3210_s6 + $0xb0] sm:$0xff] %vm1944_vm1, %v1918_v5  ;;  %v1919_v11 = vadd.f32 %v2952_v8, %v1821_v9 }
 0x2fa   :  { %1968 = vst.msk [vmem:[%s3210_s6 + $0xb8] sm:$0xff] %vm1944_vm1, %v1919_v11 }
 0x2fd   :  { %v1824_v12 = vpop.xlane.xlu0 %1823 }
 0x2fe   :  { %v1920_v35 = vadd.f32 %v2952_v8, %v1824_v12 }
 0x2ff   :  { %v1827_v13 = vpop.xlane.xlu1 %1826 }
 0x300   :  { %1969 = vst.msk [vmem:[%s3210_s6 + $0xc0] sm:$0xff] %vm1944_vm1, %v1920_v35  ;;  %v1921_v47 = vadd.f32 %v2952_v8, %v1827_v13 }
 0x302   :  { %1970 = vst.msk [vmem:[%s3210_s6 + $0xc8] sm:$0xff] %vm1944_vm1, %v1921_v47 }
 0x305   :  { %v1830_v10 = vpop.xlane.xlu0 %1829 }
 0x306   :  { %v1922_v41 = vadd.f32 %v2952_v8, %v1830_v10 }
 0x307   :  { %v1833_v14 = vpop.xlane.xlu1 %1832 }
 0x308   :  { %1971 = vst.msk [vmem:[%s3210_s6 + $0xd0] sm:$0xff] %vm1944_vm1, %v1922_v41  ;;  %v1923_v16 = vadd.f32 %v2952_v8, %v1833_v14 }
 0x30a   :  { %1972 = vst.msk [vmem:[%s3210_s6 + $0xd8] sm:$0xff] %vm1944_vm1, %v1923_v16 }
 0x30d   :  { %v1836_v54 = vpop.xlane.xlu0 %1835 }
 0x30e   :  { %v1924_v18 = vadd.f32 %v2952_v8, %v1836_v54 }
 0x30f   :  { %v1839_v20 = vpop.xlane.xlu1 %1838 }
 0x310   :  { %1973 = vst.msk [vmem:[%s3210_s6 + $0xe0] sm:$0xff] %vm1944_vm1, %v1924_v18  ;;  %v1925_v21 = vadd.f32 %v2952_v8, %v1839_v20 }
 0x312   :  { %1974 = vst.msk [vmem:[%s3210_s6 + $0xe8] sm:$0xff] %vm1944_vm1, %v1925_v21 }
 0x315   :  { %v1842_v22 = vpop.xlane.xlu0 %1841 }
 0x316   :  { %v1926_v24 = vadd.f32 %v2952_v8, %v1842_v22 }
 0x317   :  { %v1845_v25 = vpop.xlane.xlu1 %1844 }
 0x318   :  { %1975 = vst.msk [vmem:[%s3210_s6 + $0xf0] sm:$0xff] %vm1944_vm1, %v1926_v24  ;;  %v1927_v26 = vadd.f32 %v2952_v8, %v1845_v25 }
 0x31a   :  { %1976 = vst.msk [vmem:[%s3210_s6 + $0xf8] sm:$0xff] %vm1944_vm1, %v1927_v26 }
 0x31d   :  { %v1848_v3 = vpop.xlane.xlu0 %1847 }
 0x31e   :  { %v1928_v33 = vadd.f32 %v2952_v8, %v1848_v3 }
 0x31f   :  { %v1851_v27 = vpop.xlane.xlu1 %1850 }
 0x320   :  { %1977 = vst.msk [vmem:[%s3210_s6 + $0x100] sm:$0xff] %vm1944_vm1, %v1928_v33  ;;  %v1929_v28 = vadd.f32 %v2952_v8, %v1851_v27 }
 0x322   :  { %1978 = vst.msk [vmem:[%s3210_s6 + $0x108] sm:$0xff] %vm1944_vm1, %v1929_v28 }
 0x325   :  { %v1854_v29 = vpop.xlane.xlu0 %1853 }
 0x326   :  { %v1930_v40 = vadd.f32 %v2952_v8, %v1854_v29 }
 0x327   :  { %v1857_v7 = vpop.xlane.xlu1 %1856 }
 0x328   :  { %1979 = vst.msk [vmem:[%s3210_s6 + $0x110] sm:$0xff] %vm1944_vm1, %v1930_v40  ;;  %v1931_v30 = vadd.f32 %v2952_v8, %v1857_v7 }
 0x32a   :  { %1980 = vst.msk [vmem:[%s3210_s6 + $0x118] sm:$0xff] %vm1944_vm1, %v1931_v30 }
 0x32d   :  { %v1860_v32 = vpop.xlane.xlu0 %1859 }
 0x32e   :  { %v1932_v34 = vadd.f32 %v2952_v8, %v1860_v32 }
 0x32f   :  { %v1863_v36 = vpop.xlane.xlu1 %1862 }
 0x330   :  { %1981 = vst.msk [vmem:[%s3210_s6 + $0x120] sm:$0xff] %vm1944_vm1, %v1932_v34  ;;  %v1933_v19 = vadd.f32 %v2952_v8, %v1863_v36 }
 0x332   :  { %1982 = vst.msk [vmem:[%s3210_s6 + $0x128] sm:$0xff] %vm1944_vm1, %v1933_v19 }
 0x335   :  { %v1866_v38 = vpop.xlane.xlu0 %1865 }
 0x336   :  { %v1934_v39 = vadd.f32 %v2952_v8, %v1866_v38 }
 0x337   :  { %v1869_v42 = vpop.xlane.xlu1 %1868 }
 0x338   :  { %1983 = vst.msk [vmem:[%s3210_s6 + $0x130] sm:$0xff] %vm1944_vm1, %v1934_v39  ;;  %v1935_v1 = vadd.f32 %v2952_v8, %v1869_v42 }
 0x33a   :  { %1984 = vst.msk [vmem:[%s3210_s6 + $0x138] sm:$0xff] %vm1944_vm1, %v1935_v1 }
 0x33d   :  { %v1872_v31 = vpop.xlane.xlu0 %1871 }
 0x33e   :  { %v1936_v43 = vadd.f32 %v2952_v8, %v1872_v31 }
 0x33f   :  { %v1875_v44 = vpop.xlane.xlu1 %1874 }
 0x340   :  { %1985 = vst.msk [vmem:[%s3210_s6 + $0x140] sm:$0xff] %vm1944_vm1, %v1936_v43  ;;  %v1937_v6 = vadd.f32 %v2952_v8, %v1875_v44 }
 0x342   :  { %1986 = vst.msk [vmem:[%s3210_s6 + $0x148] sm:$0xff] %vm1944_vm1, %v1937_v6 }
 0x345   :  { %v1878_v45 = vpop.xlane.xlu0 %1877 }
 0x346   :  { %v1938_v46 = vadd.f32 %v2952_v8, %v1878_v45 }
 0x347   :  { %v1881_v48 = vpop.xlane.xlu1 %1880 }
 0x348   :  { %1987 = vst.msk [vmem:[%s3210_s6 + $0x150] sm:$0xff] %vm1944_vm1, %v1938_v46  ;;  %v1939_v50 = vadd.f32 %v2952_v8, %v1881_v48 }
 0x34a   :  { %1988 = vst.msk [vmem:[%s3210_s6 + $0x158] sm:$0xff] %vm1944_vm1, %v1939_v50 }
 0x34d   :  { %v1884_v37 = vpop.xlane.xlu0 %1883 }
 0x34e   :  { %v1940_v51 = vadd.f32 %v2952_v8, %v1884_v37 }
 0x34f   :  { %v1887_v52 = vpop.xlane.xlu1 %1886 }
 0x350   :  { %1989 = vst.msk [vmem:[%s3210_s6 + $0x160] sm:$0xff] %vm1944_vm1, %v1940_v51  ;;  %v1941_v15 = vadd.f32 %v2952_v8, %v1887_v52 }
 0x352   :  { %1990 = vst.msk [vmem:[%s3210_s6 + $0x168] sm:$0xff] %vm1944_vm1, %v1941_v15 }
 0x355   :  { %v1890_v56 = vpop.xlane.xlu0 %1889 }
 0x356   :  { %v1942_v58 = vadd.f32 %v2952_v8, %v1890_v56 }
 0x357   :  { %v1893_v59 = vpop.xlane.xlu1 %1892 }
 0x358   :  { %1991 = vst.msk [vmem:[%s3210_s6 + $0x170] sm:$0xff] %vm1944_vm1, %v1942_v58  ;;  %v1943_v23 = vadd.f32 %v2952_v8, %v1893_v59 }
 0x35a   :  { %1992 = vst.msk [vmem:[%s3210_s6 + $0x178] sm:$0xff] %vm1944_vm1, %v1943_v23 }
 0x35b   :  { %1997 = vsyncpa [#allocation4], 1 }

</bundles_post_ra>
